<compile_context>
chip_gen: v7x
topology: tpu7x:2x2x1
jax: 0.10.0
libtpu: 0.0.40
codegen_flags: <defaults>
</compile_context>

<pallas_src>
import jax
import jax.numpy as jnp
from jax.experimental import pallas as pl
from jax.experimental.pallas import tpu as pltpu


def _bcast_mul_kernel(scale_ref, x_ref, o_ref):
    # scale_ref: (R, 1), x_ref: (R, HW) -> elementwise multiply with broadcast
    # over the spatial (lane) axis. Pure VPU work, single block.
    o_ref[...] = x_ref[...] * scale_ref[...]


def channel_scale_mul(scale, x):
    """Computes scale * x where scale is (N, C, 1, 1) and x is (N, C, H, W)."""
    n, c, h, w = x.shape
    assert scale.shape == (n, c, 1, 1)
    rows = n * c
    hw = h * w

    # Contiguous reshapes: free views, no HBM copies.
    x2d = x.reshape(rows, hw)
    s2d = scale.reshape(rows, 1)

    # Single grid step; block shapes equal the full array dims, so there is no
    # (8, 128) divisibility requirement and no padding is needed for any C/HW.
    # Total VMEM footprint (double-buffered in+out) is well under 2 MB.
    out2d = pl.pallas_call(
        _bcast_mul_kernel,
        out_shape=jax.ShapeDtypeStruct((rows, hw), x.dtype),
        grid=(1,),
        in_specs=[
            pl.BlockSpec((rows, 1), lambda i: (0, 0)),
            pl.BlockSpec((rows, hw), lambda i: (0, 0)),
        ],
        out_specs=pl.BlockSpec((rows, hw), lambda i: (0, 0)),
        compiler_params=pltpu.CompilerParams(
            dimension_semantics=("arbitrary",)
        ),
    )(s2d, x2d)

    # TODO(synk): an op this small is normally best left to XLA fusion with the
    # producing conv/SE block; this standalone kernel is the memory-bound floor.
    return out2d.reshape(n, c, h, w)


if __name__ == "__main__":
    key = jax.random.PRNGKey(0)
    k1, k2 = jax.random.split(key)

    # Shapes implied by the module: x705 = (1, 2304, 7, 7), x710 = (1, 2304, 1, 1)
    C, H, W = 2304, 7, 7
    x705 = jax.random.normal(k1, (1, C, H, W), dtype=jnp.float32)
    x710 = jax.random.normal(k2, (1, C, 1, 1), dtype=jnp.float32)

    out = channel_scale_mul(x710, x705)
    out = jax.block_until_ready(out)

    # Reference check against plain JAX broadcasting.
    ref = x710 * x705
    assert out.shape == ref.shape
    assert jnp.allclose(out, ref, atol=1e-6, rtol=1e-6)

    print("KERNEL_OK")
</pallas_src>

<mosaic_0001>
module attributes {stable_mosaic.version = 11 : i64} {
  func.func @_bcast_mul_kernel(%arg0: i32, %arg1: memref<2304x1xf32, #tpu.memory_space<vmem>>, %arg2: memref<2304x49xf32, #tpu.memory_space<vmem>>, %arg3: memref<2304x49xf32, #tpu.memory_space<vmem>>) attributes {dimension_semantics = [#tpu.dimension_semantics<arbitrary>], iteration_bounds = array<i64: 1>, scalar_prefetch = 0 : i64, scratch_operands = 0 : i64, tpu.core_type = #tpu.core_type<tc>, window_params = [{pipeline_mode = #tpu.pipeline_mode<synchronous>, transform_indices = @transform_0, window_bounds = array<i64: 2304, 1>}, {pipeline_mode = #tpu.pipeline_mode<synchronous>, transform_indices = @transform_1, window_bounds = array<i64: 2304, 49>}, {pipeline_mode = #tpu.pipeline_mode<synchronous>, transform_indices = @transform_2, window_bounds = array<i64: 2304, 49>}]} {
    %c0 = arith.constant 0 : index
    %c0_0 = arith.constant 0 : index
    %0 = vector.load %arg2[%c0, %c0_0] : memref<2304x49xf32, #tpu.memory_space<vmem>>, vector<2304x49xf32>
    %c0_1 = arith.constant 0 : index
    %c0_2 = arith.constant 0 : index
    %1 = vector.load %arg1[%c0_1, %c0_2] : memref<2304x1xf32, #tpu.memory_space<vmem>>, vector<2304x1xf32>
    %2 = vector.broadcast %1 : vector<2304x1xf32> to vector<2304x49xf32>
    %3 = arith.mulf %0, %2 : vector<2304x49xf32>
    %c0_3 = arith.constant 0 : index
    %c0_4 = arith.constant 0 : index
    %4 = vector.load %arg3[%c0_3, %c0_4] : memref<2304x49xf32, #tpu.memory_space<vmem>>, vector<2304x49xf32>
    tpu.vector_store %arg3[%c0_3, %c0_4], %3 {strides = array<i32>} : memref<2304x49xf32, #tpu.memory_space<vmem>>, vector<2304x49xf32>,
    return
  }
  func.func @transform_0(%arg0: i32) -> (i32, i32) {
    %c0_i32 = arith.constant 0 : i32
    %c0_i32_0 = arith.constant 0 : i32
    %c0_i32_1 = arith.constant 0 : i32
    return %c0_i32, %c0_i32_0 : i32, i32
  }
  func.func @transform_1(%arg0: i32) -> (i32, i32) {
    %c0_i32 = arith.constant 0 : i32
    %c0_i32_0 = arith.constant 0 : i32
    %c0_i32_1 = arith.constant 0 : i32
    return %c0_i32, %c0_i32_0 : i32, i32
  }
  func.func @transform_2(%arg0: i32) -> (i32, i32) {
    %c0_i32 = arith.constant 0 : i32
    %c0_i32_0 = arith.constant 0 : i32
    %c0_i32_1 = arith.constant 0 : i32
    return %c0_i32, %c0_i32_0 : i32, i32
  }
}

</mosaic_0001>

<bundles_post_ra>
// kernel: tpu_custom_call.1
= control target key start
LH: loop header
LB: loop body
LE: loop exit
PB: predicated region body
PF: predicated region fallthrough
CT: control target
= control target key end

     0   :  { %v2611_v0 = vmov 0   ;;  %vm2315_vm0 = vcmask 400384   ;;  %s5507_s0 = inlined_call_operand.vmem [shape: f32[2304,1], index: 0, kind: input, shape index: {}]   ;;  %s5508_s1 = inlined_call_operand.vmem [shape: f32[2304,49], index: 1, kind: input, shape index: {}]   ;;  %s5509_s2 = inlined_call_operand.vmem [shape: f32[2304,49], index: 2, kind: output, shape index: {}]  }
   0x1   :  { %2610 = vset.pattern.permute.xlu1 %v2611_v0  ;;  %2609 = vset.pattern.permute.xlu0 %v2611_v0  ;;  %v301_v1 = vld [vmem:[%s5507_s0 + $0x10] sm:$0xff]  ;;  %v299_v2 = vld [vmem:[%s5507_s0] sm:$0xff]  ;;  %v302_v3 = vld [vmem:[%s5507_s0 + $0x18] sm:$0xff] }
   0x2   :  { %599 = vperm.xlu1 %2610, %v301_v1   ;;  %589 = vperm.xlu0 %2609, %v299_v2   ;;  %v300_v4 = vld [vmem:[%s5507_s0 + $0x8] sm:$0xff]  ;;  %v303_v6 = vld [vmem:[%s5507_s0 + $0x20] sm:$0xff]  ;;  %v306_v7 = vld [vmem:[%s5507_s0 + $0x38] sm:$0xff] }
   0x3   :  { %v304_v5 = vld [vmem:[%s5507_s0 + $0x28] sm:$0xff]  ;;  %v305_v8 = vld [vmem:[%s5507_s0 + $0x30] sm:$0xff]  ;;  %v307_v10 = vld [vmem:[%s5507_s0 + $0x40] sm:$0xff] }
   0x4   :  { %v308_v9 = vld [vmem:[%s5507_s0 + $0x48] sm:$0xff]  ;;  %v310_v11 = vld [vmem:[%s5507_s0 + $0x58] sm:$0xff]  ;;  %v309_v12 = vld [vmem:[%s5507_s0 + $0x50] sm:$0xff] }
   0x5   :  { %v312_v13 = vld [vmem:[%s5507_s0 + $0x68] sm:$0xff]  ;;  %v311_v14 = vld [vmem:[%s5507_s0 + $0x60] sm:$0xff]  ;;  %v314_v15 = vld [vmem:[%s5507_s0 + $0x78] sm:$0xff] }
   0x6   :  { %604 = vperm.xlu1 %2610, %v302_v3   ;;  %594 = vperm.xlu0 %2609, %v300_v4   ;;  %v313_v16 = vld [vmem:[%s5507_s0 + $0x70] sm:$0xff]  ;;  %v316_v17 = vld [vmem:[%s5507_s0 + $0x88] sm:$0xff]  ;;  %v315_v18 = vld [vmem:[%s5507_s0 + $0x80] sm:$0xff] }
   0x7   :  { %v318_v19 = vld [vmem:[%s5507_s0 + $0x98] sm:$0xff]  ;;  %v317_v20 = vld [vmem:[%s5507_s0 + $0x90] sm:$0xff]  ;;  %v320_v21 = vld [vmem:[%s5507_s0 + $0xa8] sm:$0xff] }
   0x8   :  { %v319_v22 = vld [vmem:[%s5507_s0 + $0xa0] sm:$0xff]  ;;  %v322_v23 = vld [vmem:[%s5507_s0 + $0xb8] sm:$0xff]  ;;  %v321_v24 = vld [vmem:[%s5507_s0 + $0xb0] sm:$0xff] }
   0x9   :  { %v324_v25 = vld [vmem:[%s5507_s0 + $0xc8] sm:$0xff]  ;;  %v323_v26 = vld [vmem:[%s5507_s0 + $0xc0] sm:$0xff]  ;;  %v326_v27 = vld [vmem:[%s5507_s0 + $0xd8] sm:$0xff] }
   0xa   :  { %614 = vperm.xlu1 %2610, %v304_v5   ;;  %609 = vperm.xlu0 %2609, %v303_v6   ;;  %v325_v28 = vld [vmem:[%s5507_s0 + $0xd0] sm:$0xff]  ;;  %v328_v29 = vld [vmem:[%s5507_s0 + $0xe8] sm:$0xff]  ;;  %v327_v30 = vld [vmem:[%s5507_s0 + $0xe0] sm:$0xff] }
   0xb   :  { %v330_v31 = vld [vmem:[%s5507_s0 + $0xf8] sm:$0xff]  ;;  %v329_v32 = vld [vmem:[%s5507_s0 + $0xf0] sm:$0xff]  ;;  %v332_v33 = vld [vmem:[%s5507_s0 + $0x108] sm:$0xff] }
   0xc   :  { %v331_v34 = vld [vmem:[%s5507_s0 + $0x100] sm:$0xff]  ;;  %v334_v35 = vld [vmem:[%s5507_s0 + $0x118] sm:$0xff]  ;;  %v333_v36 = vld [vmem:[%s5507_s0 + $0x110] sm:$0xff] }
   0xd   :  { %v336_v37 = vld [vmem:[%s5507_s0 + $0x128] sm:$0xff]  ;;  %v335_v38 = vld [vmem:[%s5507_s0 + $0x120] sm:$0xff]  ;;  %v338_v39 = vld [vmem:[%s5507_s0 + $0x138] sm:$0xff] }
   0xe   :  { %624 = vperm.xlu1 %2610, %v306_v7   ;;  %619 = vperm.xlu0 %2609, %v305_v8   ;;  %v337_v40 = vld [vmem:[%s5507_s0 + $0x130] sm:$0xff]  ;;  %v340_v41 = vld [vmem:[%s5507_s0 + $0x148] sm:$0xff]  ;;  %v339_v42 = vld [vmem:[%s5507_s0 + $0x140] sm:$0xff] }
   0xf   :  { %v342_v43 = vld [vmem:[%s5507_s0 + $0x158] sm:$0xff]  ;;  %v341_v44 = vld [vmem:[%s5507_s0 + $0x150] sm:$0xff]  ;;  %v344_v45 = vld [vmem:[%s5507_s0 + $0x168] sm:$0xff] }
  0x10   :  { %v343_v46 = vld [vmem:[%s5507_s0 + $0x160] sm:$0xff]  ;;  %v346_v47 = vld [vmem:[%s5507_s0 + $0x178] sm:$0xff]  ;;  %v345_v48 = vld [vmem:[%s5507_s0 + $0x170] sm:$0xff] }
  0x11   :  { %v348_v49 = vld [vmem:[%s5507_s0 + $0x188] sm:$0xff]  ;;  %v347_v50 = vld [vmem:[%s5507_s0 + $0x180] sm:$0xff]  ;;  %v350_v51 = vld [vmem:[%s5507_s0 + $0x198] sm:$0xff] }
  0x12   :  { %634 = vperm.xlu1 %2610, %v308_v9   ;;  %629 = vperm.xlu0 %2609, %v307_v10   ;;  %v349_v52 = vld [vmem:[%s5507_s0 + $0x190] sm:$0xff]  ;;  %v352_v53 = vld [vmem:[%s5507_s0 + $0x1a8] sm:$0xff]  ;;  %v351_v54 = vld [vmem:[%s5507_s0 + $0x1a0] sm:$0xff] }
  0x13   :  { %v354_v55 = vld [vmem:[%s5507_s0 + $0x1b8] sm:$0xff]  ;;  %v353_v56 = vld [vmem:[%s5507_s0 + $0x1b0] sm:$0xff]  ;;  %v356_v57 = vld [vmem:[%s5507_s0 + $0x1c8] sm:$0xff] }
  0x14   :  { %v355_v58 = vld [vmem:[%s5507_s0 + $0x1c0] sm:$0xff]  ;;  %v358_v59 = vld [vmem:[%s5507_s0 + $0x1d8] sm:$0xff]  ;;  %v357_v60 = vld [vmem:[%s5507_s0 + $0x1d0] sm:$0xff] }
  0x15   :  { %v360_v61 = vld [vmem:[%s5507_s0 + $0x1e8] sm:$0xff]  ;;  %v359_v62 = vld [vmem:[%s5507_s0 + $0x1e0] sm:$0xff]  ;;  %v362_v63 = vld [vmem:[%s5507_s0 + $0x1f8] sm:$0xff] }
  0x16   :  { %644 = vperm.xlu1 %2610, %v310_v11   ;;  %639 = vperm.xlu0 %2609, %v309_v12   ;;  %v361_v0 = vld [vmem:[%s5507_s0 + $0x1f0] sm:$0xff]  ;;  %v11_v2 = vld [vmem:[%s5508_s1] sm:$0xff]  ;;  %v364_v3 = vld [vmem:[%s5507_s0 + $0x208] sm:$0xff] }
  0x17   :  { %v13_v1 = vld [vmem:[%s5508_s1 + $0x10] sm:$0xff]  ;;  %v363_v4 = vld [vmem:[%s5507_s0 + $0x200] sm:$0xff]  ;;  %v14_v9 = vld [vmem:[%s5508_s1 + $0x18] sm:$0xff] }
  0x18   :  { %v12_v10 = vld [vmem:[%s5508_s1 + $0x8] sm:$0xff]  ;;  %v366_v11 = vld [vmem:[%s5507_s0 + $0x218] sm:$0xff]  ;;  %v365_v12 = vld [vmem:[%s5507_s0 + $0x210] sm:$0xff] }
  0x1a   :  { %654 = vperm.xlu1 %2610, %v312_v13   ;;  %649 = vperm.xlu0 %2609, %v311_v14  }
  0x1e   :  { %664 = vperm.xlu1 %2610, %v314_v15   ;;  %659 = vperm.xlu0 %2609, %v313_v16  }
  0x22   :  { %674 = vperm.xlu1 %2610, %v316_v17   ;;  %669 = vperm.xlu0 %2609, %v315_v18   ;;  %v16_v17 = vld [vmem:[%s5508_s1 + $0x28] sm:$0xff]  ;;  %v15_v18 = vld [vmem:[%s5508_s1 + $0x20] sm:$0xff] }
  0x26   :  { %684 = vperm.xlu1 %2610, %v318_v19   ;;  %679 = vperm.xlu0 %2609, %v317_v20   ;;  %v368_v19 = vld [vmem:[%s5507_s0 + $0x228] sm:$0xff]  ;;  %v367_v20 = vld [vmem:[%s5507_s0 + $0x220] sm:$0xff] }
  0x2a   :  { %694 = vperm.xlu1 %2610, %v320_v21   ;;  %689 = vperm.xlu0 %2609, %v319_v22  }
  0x2e   :  { %704 = vperm.xlu1 %2610, %v322_v23   ;;  %699 = vperm.xlu0 %2609, %v321_v24  }
  0x32   :  { %714 = vperm.xlu1 %2610, %v324_v25   ;;  %709 = vperm.xlu0 %2609, %v323_v26   ;;  %v18_v25 = vld [vmem:[%s5508_s1 + $0x38] sm:$0xff]  ;;  %v17_v26 = vld [vmem:[%s5508_s1 + $0x30] sm:$0xff] }
  0x36   :  { %724 = vperm.xlu1 %2610, %v326_v27   ;;  %719 = vperm.xlu0 %2609, %v325_v28   ;;  %v370_v27 = vld [vmem:[%s5507_s0 + $0x238] sm:$0xff]  ;;  %v369_v28 = vld [vmem:[%s5507_s0 + $0x230] sm:$0xff] }
  0x3a   :  { %734 = vperm.xlu1 %2610, %v328_v29   ;;  %729 = vperm.xlu0 %2609, %v327_v30  }
  0x3e   :  { %744 = vperm.xlu1 %2610, %v330_v31   ;;  %739 = vperm.xlu0 %2609, %v329_v32  }
  0x42   :  { %754 = vperm.xlu1 %2610, %v332_v33   ;;  %749 = vperm.xlu0 %2609, %v331_v34   ;;  %v20_v33 = vld [vmem:[%s5508_s1 + $0x48] sm:$0xff]  ;;  %v19_v34 = vld [vmem:[%s5508_s1 + $0x40] sm:$0xff] }
  0x46   :  { %764 = vperm.xlu1 %2610, %v334_v35   ;;  %759 = vperm.xlu0 %2609, %v333_v36   ;;  %v372_v35 = vld [vmem:[%s5507_s0 + $0x248] sm:$0xff]  ;;  %v371_v36 = vld [vmem:[%s5507_s0 + $0x240] sm:$0xff] }
  0x4a   :  { %774 = vperm.xlu1 %2610, %v336_v37   ;;  %769 = vperm.xlu0 %2609, %v335_v38  }
  0x4e   :  { %784 = vperm.xlu1 %2610, %v338_v39   ;;  %779 = vperm.xlu0 %2609, %v337_v40  }
  0x52   :  { %794 = vperm.xlu1 %2610, %v340_v41   ;;  %789 = vperm.xlu0 %2609, %v339_v42   ;;  %v22_v41 = vld [vmem:[%s5508_s1 + $0x58] sm:$0xff]  ;;  %v21_v42 = vld [vmem:[%s5508_s1 + $0x50] sm:$0xff] }
  0x56   :  { %804 = vperm.xlu1 %2610, %v342_v43   ;;  %799 = vperm.xlu0 %2609, %v341_v44   ;;  %v374_v43 = vld [vmem:[%s5507_s0 + $0x258] sm:$0xff]  ;;  %v373_v44 = vld [vmem:[%s5507_s0 + $0x250] sm:$0xff] }
  0x5a   :  { %814 = vperm.xlu1 %2610, %v344_v45   ;;  %809 = vperm.xlu0 %2609, %v343_v46  }
  0x5e   :  { %824 = vperm.xlu1 %2610, %v346_v47   ;;  %819 = vperm.xlu0 %2609, %v345_v48  }
  0x62   :  { %834 = vperm.xlu1 %2610, %v348_v49   ;;  %829 = vperm.xlu0 %2609, %v347_v50   ;;  %v24_v49 = vld [vmem:[%s5508_s1 + $0x68] sm:$0xff]  ;;  %v23_v50 = vld [vmem:[%s5508_s1 + $0x60] sm:$0xff] }
  0x66   :  { %844 = vperm.xlu1 %2610, %v350_v51   ;;  %839 = vperm.xlu0 %2609, %v349_v52   ;;  %v376_v51 = vld [vmem:[%s5507_s0 + $0x268] sm:$0xff]  ;;  %v375_v52 = vld [vmem:[%s5507_s0 + $0x260] sm:$0xff] }
  0x6a   :  { %854 = vperm.xlu1 %2610, %v352_v53   ;;  %849 = vperm.xlu0 %2609, %v351_v54  }
  0x6e   :  { %864 = vperm.xlu1 %2610, %v354_v55   ;;  %859 = vperm.xlu0 %2609, %v353_v56  }
  0x72   :  { %874 = vperm.xlu1 %2610, %v356_v57   ;;  %869 = vperm.xlu0 %2609, %v355_v58   ;;  %v26_v57 = vld [vmem:[%s5508_s1 + $0x78] sm:$0xff]  ;;  %v25_v58 = vld [vmem:[%s5508_s1 + $0x70] sm:$0xff] }
  0x76   :  { %884 = vperm.xlu1 %2610, %v358_v59   ;;  %879 = vperm.xlu0 %2609, %v357_v60   ;;  %v378_v59 = vld [vmem:[%s5507_s0 + $0x278] sm:$0xff]  ;;  %v377_v60 = vld [vmem:[%s5507_s0 + $0x270] sm:$0xff] }
  0x7a   :  { %894 = vperm.xlu1 %2610, %v360_v61   ;;  %889 = vperm.xlu0 %2609, %v359_v62  }
  0x7e   :  { %904 = vperm.xlu1 %2610, %v362_v63   ;;  %899 = vperm.xlu0 %2609, %v361_v0  }
  0x81   :  { %v600_v5 = vpop.permute.xlu1 %599  ;;  %v590_v6 = vpop.permute.xlu0 %589 }
  0x82   :  { %v2029_v7 = vmul.f32 %v600_v5, %v13_v1  ;;  %v2027_v8 = vmul.f32 %v590_v6, %v11_v2  ;;  %914 = vperm.xlu1 %2610, %v364_v3   ;;  %909 = vperm.xlu0 %2609, %v363_v4   ;;  %v28_v1 = vld [vmem:[%s5508_s1 + $0x88] sm:$0xff]  ;;  %v27_v2 = vld [vmem:[%s5508_s1 + $0x80] sm:$0xff] }
  0x83   :  { %v380_v3 = vld [vmem:[%s5507_s0 + $0x288] sm:$0xff]  ;;  %v379_v4 = vld [vmem:[%s5507_s0 + $0x280] sm:$0xff] }
  0x84   :  { %2318 = vst.msk [vmem:[%s5509_s2 + $0x10] sm:$0xff] %vm2315_vm0, %v2029_v7  ;;  %2316 = vst.msk [vmem:[%s5509_s2] sm:$0xff] %vm2315_vm0, %v2027_v8 }
  0x85   :  { %v605_v13 = vpop.permute.xlu1 %604  ;;  %v595_v14 = vpop.permute.xlu0 %594 }
  0x86   :  { %v2030_v15 = vmul.f32 %v605_v13, %v14_v9  ;;  %v2028_v16 = vmul.f32 %v595_v14, %v12_v10  ;;  %924 = vperm.xlu1 %2610, %v366_v11   ;;  %919 = vperm.xlu0 %2609, %v365_v12   ;;  %v30_v9 = vld [vmem:[%s5508_s1 + $0x98] sm:$0xff]  ;;  %v29_v10 = vld [vmem:[%s5508_s1 + $0x90] sm:$0xff] }
  0x87   :  { %v382_v11 = vld [vmem:[%s5507_s0 + $0x298] sm:$0xff]  ;;  %v381_v12 = vld [vmem:[%s5507_s0 + $0x290] sm:$0xff] }
  0x88   :  { %2319 = vst.msk [vmem:[%s5509_s2 + $0x18] sm:$0xff] %vm2315_vm0, %v2030_v15  ;;  %2317 = vst.msk [vmem:[%s5509_s2 + $0x8] sm:$0xff] %vm2315_vm0, %v2028_v16 }
  0x89   :  { %v615_v21 = vpop.permute.xlu1 %614  ;;  %v610_v22 = vpop.permute.xlu0 %609 }
  0x8a   :  { %v2032_v23 = vmul.f32 %v615_v21, %v16_v17  ;;  %v2031_v24 = vmul.f32 %v610_v22, %v15_v18  ;;  %934 = vperm.xlu1 %2610, %v368_v19   ;;  %929 = vperm.xlu0 %2609, %v367_v20   ;;  %v32_v17 = vld [vmem:[%s5508_s1 + $0xa8] sm:$0xff]  ;;  %v31_v18 = vld [vmem:[%s5508_s1 + $0xa0] sm:$0xff] }
  0x8b   :  { %v384_v19 = vld [vmem:[%s5507_s0 + $0x2a8] sm:$0xff]  ;;  %v383_v20 = vld [vmem:[%s5507_s0 + $0x2a0] sm:$0xff] }
  0x8c   :  { %2321 = vst.msk [vmem:[%s5509_s2 + $0x28] sm:$0xff] %vm2315_vm0, %v2032_v23  ;;  %2320 = vst.msk [vmem:[%s5509_s2 + $0x20] sm:$0xff] %vm2315_vm0, %v2031_v24 }
  0x8d   :  { %v625_v29 = vpop.permute.xlu1 %624  ;;  %v620_v30 = vpop.permute.xlu0 %619 }
  0x8e   :  { %v2034_v31 = vmul.f32 %v625_v29, %v18_v25  ;;  %v2033_v32 = vmul.f32 %v620_v30, %v17_v26  ;;  %944 = vperm.xlu1 %2610, %v370_v27   ;;  %939 = vperm.xlu0 %2609, %v369_v28   ;;  %v34_v25 = vld [vmem:[%s5508_s1 + $0xb8] sm:$0xff]  ;;  %v33_v26 = vld [vmem:[%s5508_s1 + $0xb0] sm:$0xff] }
  0x8f   :  { %v386_v27 = vld [vmem:[%s5507_s0 + $0x2b8] sm:$0xff]  ;;  %v385_v28 = vld [vmem:[%s5507_s0 + $0x2b0] sm:$0xff] }
  0x90   :  { %2323 = vst.msk [vmem:[%s5509_s2 + $0x38] sm:$0xff] %vm2315_vm0, %v2034_v31  ;;  %2322 = vst.msk [vmem:[%s5509_s2 + $0x30] sm:$0xff] %vm2315_vm0, %v2033_v32 }
  0x91   :  { %v635_v37 = vpop.permute.xlu1 %634  ;;  %v630_v38 = vpop.permute.xlu0 %629 }
  0x92   :  { %v2036_v39 = vmul.f32 %v635_v37, %v20_v33  ;;  %v2035_v40 = vmul.f32 %v630_v38, %v19_v34  ;;  %954 = vperm.xlu1 %2610, %v372_v35   ;;  %949 = vperm.xlu0 %2609, %v371_v36   ;;  %v36_v33 = vld [vmem:[%s5508_s1 + $0xc8] sm:$0xff]  ;;  %v35_v34 = vld [vmem:[%s5508_s1 + $0xc0] sm:$0xff] }
  0x93   :  { %v388_v35 = vld [vmem:[%s5507_s0 + $0x2c8] sm:$0xff]  ;;  %v387_v36 = vld [vmem:[%s5507_s0 + $0x2c0] sm:$0xff] }
  0x94   :  { %2325 = vst.msk [vmem:[%s5509_s2 + $0x48] sm:$0xff] %vm2315_vm0, %v2036_v39  ;;  %2324 = vst.msk [vmem:[%s5509_s2 + $0x40] sm:$0xff] %vm2315_vm0, %v2035_v40 }
  0x95   :  { %v645_v45 = vpop.permute.xlu1 %644  ;;  %v640_v46 = vpop.permute.xlu0 %639 }
  0x96   :  { %v2038_v47 = vmul.f32 %v645_v45, %v22_v41  ;;  %v2037_v48 = vmul.f32 %v640_v46, %v21_v42  ;;  %964 = vperm.xlu1 %2610, %v374_v43   ;;  %959 = vperm.xlu0 %2609, %v373_v44   ;;  %v38_v41 = vld [vmem:[%s5508_s1 + $0xd8] sm:$0xff]  ;;  %v37_v42 = vld [vmem:[%s5508_s1 + $0xd0] sm:$0xff] }
  0x97   :  { %v390_v43 = vld [vmem:[%s5507_s0 + $0x2d8] sm:$0xff]  ;;  %v389_v44 = vld [vmem:[%s5507_s0 + $0x2d0] sm:$0xff] }
  0x98   :  { %2327 = vst.msk [vmem:[%s5509_s2 + $0x58] sm:$0xff] %vm2315_vm0, %v2038_v47  ;;  %2326 = vst.msk [vmem:[%s5509_s2 + $0x50] sm:$0xff] %vm2315_vm0, %v2037_v48 }
  0x99   :  { %v655_v53 = vpop.permute.xlu1 %654  ;;  %v650_v54 = vpop.permute.xlu0 %649 }
  0x9a   :  { %v2040_v55 = vmul.f32 %v655_v53, %v24_v49  ;;  %v2039_v56 = vmul.f32 %v650_v54, %v23_v50  ;;  %974 = vperm.xlu1 %2610, %v376_v51   ;;  %969 = vperm.xlu0 %2609, %v375_v52   ;;  %v40_v49 = vld [vmem:[%s5508_s1 + $0xe8] sm:$0xff]  ;;  %v39_v50 = vld [vmem:[%s5508_s1 + $0xe0] sm:$0xff] }
  0x9b   :  { %v392_v51 = vld [vmem:[%s5507_s0 + $0x2e8] sm:$0xff]  ;;  %v391_v52 = vld [vmem:[%s5507_s0 + $0x2e0] sm:$0xff] }
  0x9c   :  { %2329 = vst.msk [vmem:[%s5509_s2 + $0x68] sm:$0xff] %vm2315_vm0, %v2040_v55  ;;  %2328 = vst.msk [vmem:[%s5509_s2 + $0x60] sm:$0xff] %vm2315_vm0, %v2039_v56 }
  0x9d   :  { %v665_v61 = vpop.permute.xlu1 %664  ;;  %v660_v62 = vpop.permute.xlu0 %659 }
  0x9e   :  { %v2042_v63 = vmul.f32 %v665_v61, %v26_v57  ;;  %v2041_v0 = vmul.f32 %v660_v62, %v25_v58  ;;  %984 = vperm.xlu1 %2610, %v378_v59   ;;  %979 = vperm.xlu0 %2609, %v377_v60   ;;  %v42_v57 = vld [vmem:[%s5508_s1 + $0xf8] sm:$0xff]  ;;  %v41_v58 = vld [vmem:[%s5508_s1 + $0xf0] sm:$0xff] }
  0x9f   :  { %v394_v59 = vld [vmem:[%s5507_s0 + $0x2f8] sm:$0xff]  ;;  %v393_v60 = vld [vmem:[%s5507_s0 + $0x2f0] sm:$0xff] }
  0xa0   :  { %2331 = vst.msk [vmem:[%s5509_s2 + $0x78] sm:$0xff] %vm2315_vm0, %v2042_v63  ;;  %2330 = vst.msk [vmem:[%s5509_s2 + $0x70] sm:$0xff] %vm2315_vm0, %v2041_v0 }
  0xa1   :  { %v675_v5 = vpop.permute.xlu1 %674  ;;  %v670_v6 = vpop.permute.xlu0 %669 }
  0xa2   :  { %v2044_v7 = vmul.f32 %v675_v5, %v28_v1  ;;  %v2043_v8 = vmul.f32 %v670_v6, %v27_v2  ;;  %994 = vperm.xlu1 %2610, %v380_v3   ;;  %989 = vperm.xlu0 %2609, %v379_v4   ;;  %v44_v1 = vld [vmem:[%s5508_s1 + $0x108] sm:$0xff]  ;;  %v43_v2 = vld [vmem:[%s5508_s1 + $0x100] sm:$0xff] }
  0xa3   :  { %v396_v3 = vld [vmem:[%s5507_s0 + $0x308] sm:$0xff]  ;;  %v395_v4 = vld [vmem:[%s5507_s0 + $0x300] sm:$0xff] }
  0xa4   :  { %2333 = vst.msk [vmem:[%s5509_s2 + $0x88] sm:$0xff] %vm2315_vm0, %v2044_v7  ;;  %2332 = vst.msk [vmem:[%s5509_s2 + $0x80] sm:$0xff] %vm2315_vm0, %v2043_v8 }
  0xa5   :  { %v685_v13 = vpop.permute.xlu1 %684  ;;  %v680_v14 = vpop.permute.xlu0 %679 }
  0xa6   :  { %v2046_v15 = vmul.f32 %v685_v13, %v30_v9  ;;  %v2045_v16 = vmul.f32 %v680_v14, %v29_v10  ;;  %1004 = vperm.xlu1 %2610, %v382_v11   ;;  %999 = vperm.xlu0 %2609, %v381_v12   ;;  %v46_v9 = vld [vmem:[%s5508_s1 + $0x118] sm:$0xff]  ;;  %v45_v10 = vld [vmem:[%s5508_s1 + $0x110] sm:$0xff] }
  0xa7   :  { %v398_v11 = vld [vmem:[%s5507_s0 + $0x318] sm:$0xff]  ;;  %v397_v12 = vld [vmem:[%s5507_s0 + $0x310] sm:$0xff] }
  0xa8   :  { %2335 = vst.msk [vmem:[%s5509_s2 + $0x98] sm:$0xff] %vm2315_vm0, %v2046_v15  ;;  %2334 = vst.msk [vmem:[%s5509_s2 + $0x90] sm:$0xff] %vm2315_vm0, %v2045_v16 }
  0xa9   :  { %v695_v21 = vpop.permute.xlu1 %694  ;;  %v690_v22 = vpop.permute.xlu0 %689 }
  0xaa   :  { %v2048_v23 = vmul.f32 %v695_v21, %v32_v17  ;;  %v2047_v24 = vmul.f32 %v690_v22, %v31_v18  ;;  %1014 = vperm.xlu1 %2610, %v384_v19   ;;  %1009 = vperm.xlu0 %2609, %v383_v20   ;;  %v48_v17 = vld [vmem:[%s5508_s1 + $0x128] sm:$0xff]  ;;  %v47_v18 = vld [vmem:[%s5508_s1 + $0x120] sm:$0xff] }
  0xab   :  { %v400_v19 = vld [vmem:[%s5507_s0 + $0x328] sm:$0xff]  ;;  %v399_v20 = vld [vmem:[%s5507_s0 + $0x320] sm:$0xff] }
  0xac   :  { %2337 = vst.msk [vmem:[%s5509_s2 + $0xa8] sm:$0xff] %vm2315_vm0, %v2048_v23  ;;  %2336 = vst.msk [vmem:[%s5509_s2 + $0xa0] sm:$0xff] %vm2315_vm0, %v2047_v24 }
  0xad   :  { %v705_v29 = vpop.permute.xlu1 %704  ;;  %v700_v30 = vpop.permute.xlu0 %699 }
  0xae   :  { %v2050_v31 = vmul.f32 %v705_v29, %v34_v25  ;;  %v2049_v32 = vmul.f32 %v700_v30, %v33_v26  ;;  %1024 = vperm.xlu1 %2610, %v386_v27   ;;  %1019 = vperm.xlu0 %2609, %v385_v28   ;;  %v50_v25 = vld [vmem:[%s5508_s1 + $0x138] sm:$0xff]  ;;  %v49_v26 = vld [vmem:[%s5508_s1 + $0x130] sm:$0xff] }
  0xaf   :  { %v402_v27 = vld [vmem:[%s5507_s0 + $0x338] sm:$0xff]  ;;  %v401_v28 = vld [vmem:[%s5507_s0 + $0x330] sm:$0xff] }
  0xb0   :  { %2339 = vst.msk [vmem:[%s5509_s2 + $0xb8] sm:$0xff] %vm2315_vm0, %v2050_v31  ;;  %2338 = vst.msk [vmem:[%s5509_s2 + $0xb0] sm:$0xff] %vm2315_vm0, %v2049_v32 }
  0xb1   :  { %v715_v37 = vpop.permute.xlu1 %714  ;;  %v710_v38 = vpop.permute.xlu0 %709 }
  0xb2   :  { %v2052_v39 = vmul.f32 %v715_v37, %v36_v33  ;;  %v2051_v40 = vmul.f32 %v710_v38, %v35_v34  ;;  %1034 = vperm.xlu1 %2610, %v388_v35   ;;  %1029 = vperm.xlu0 %2609, %v387_v36   ;;  %v52_v33 = vld [vmem:[%s5508_s1 + $0x148] sm:$0xff]  ;;  %v51_v34 = vld [vmem:[%s5508_s1 + $0x140] sm:$0xff] }
  0xb3   :  { %v404_v35 = vld [vmem:[%s5507_s0 + $0x348] sm:$0xff]  ;;  %v403_v36 = vld [vmem:[%s5507_s0 + $0x340] sm:$0xff] }
  0xb4   :  { %2341 = vst.msk [vmem:[%s5509_s2 + $0xc8] sm:$0xff] %vm2315_vm0, %v2052_v39  ;;  %2340 = vst.msk [vmem:[%s5509_s2 + $0xc0] sm:$0xff] %vm2315_vm0, %v2051_v40 }
  0xb5   :  { %v725_v45 = vpop.permute.xlu1 %724  ;;  %v720_v46 = vpop.permute.xlu0 %719 }
  0xb6   :  { %v2054_v47 = vmul.f32 %v725_v45, %v38_v41  ;;  %v2053_v48 = vmul.f32 %v720_v46, %v37_v42  ;;  %1044 = vperm.xlu1 %2610, %v390_v43   ;;  %1039 = vperm.xlu0 %2609, %v389_v44   ;;  %v54_v41 = vld [vmem:[%s5508_s1 + $0x158] sm:$0xff]  ;;  %v53_v42 = vld [vmem:[%s5508_s1 + $0x150] sm:$0xff] }
  0xb7   :  { %v406_v43 = vld [vmem:[%s5507_s0 + $0x358] sm:$0xff]  ;;  %v405_v44 = vld [vmem:[%s5507_s0 + $0x350] sm:$0xff] }
  0xb8   :  { %2343 = vst.msk [vmem:[%s5509_s2 + $0xd8] sm:$0xff] %vm2315_vm0, %v2054_v47  ;;  %2342 = vst.msk [vmem:[%s5509_s2 + $0xd0] sm:$0xff] %vm2315_vm0, %v2053_v48 }
  0xb9   :  { %v735_v53 = vpop.permute.xlu1 %734  ;;  %v730_v54 = vpop.permute.xlu0 %729 }
  0xba   :  { %v2056_v55 = vmul.f32 %v735_v53, %v40_v49  ;;  %v2055_v56 = vmul.f32 %v730_v54, %v39_v50  ;;  %1054 = vperm.xlu1 %2610, %v392_v51   ;;  %1049 = vperm.xlu0 %2609, %v391_v52   ;;  %v56_v49 = vld [vmem:[%s5508_s1 + $0x168] sm:$0xff]  ;;  %v55_v50 = vld [vmem:[%s5508_s1 + $0x160] sm:$0xff] }
  0xbb   :  { %v408_v51 = vld [vmem:[%s5507_s0 + $0x368] sm:$0xff]  ;;  %v407_v52 = vld [vmem:[%s5507_s0 + $0x360] sm:$0xff] }
  0xbc   :  { %2345 = vst.msk [vmem:[%s5509_s2 + $0xe8] sm:$0xff] %vm2315_vm0, %v2056_v55  ;;  %2344 = vst.msk [vmem:[%s5509_s2 + $0xe0] sm:$0xff] %vm2315_vm0, %v2055_v56 }
  0xbd   :  { %v745_v61 = vpop.permute.xlu1 %744  ;;  %v740_v62 = vpop.permute.xlu0 %739 }
  0xbe   :  { %v2058_v63 = vmul.f32 %v745_v61, %v42_v57  ;;  %v2057_v0 = vmul.f32 %v740_v62, %v41_v58  ;;  %1064 = vperm.xlu1 %2610, %v394_v59   ;;  %1059 = vperm.xlu0 %2609, %v393_v60   ;;  %v58_v57 = vld [vmem:[%s5508_s1 + $0x178] sm:$0xff]  ;;  %v57_v58 = vld [vmem:[%s5508_s1 + $0x170] sm:$0xff] }
  0xbf   :  { %v410_v59 = vld [vmem:[%s5507_s0 + $0x378] sm:$0xff]  ;;  %v409_v60 = vld [vmem:[%s5507_s0 + $0x370] sm:$0xff] }
  0xc0   :  { %2347 = vst.msk [vmem:[%s5509_s2 + $0xf8] sm:$0xff] %vm2315_vm0, %v2058_v63  ;;  %2346 = vst.msk [vmem:[%s5509_s2 + $0xf0] sm:$0xff] %vm2315_vm0, %v2057_v0 }
  0xc1   :  { %v755_v5 = vpop.permute.xlu1 %754  ;;  %v750_v6 = vpop.permute.xlu0 %749 }
  0xc2   :  { %v2060_v7 = vmul.f32 %v755_v5, %v44_v1  ;;  %v2059_v8 = vmul.f32 %v750_v6, %v43_v2  ;;  %1074 = vperm.xlu1 %2610, %v396_v3   ;;  %1069 = vperm.xlu0 %2609, %v395_v4   ;;  %v60_v1 = vld [vmem:[%s5508_s1 + $0x188] sm:$0xff]  ;;  %v59_v2 = vld [vmem:[%s5508_s1 + $0x180] sm:$0xff] }
  0xc3   :  { %v412_v3 = vld [vmem:[%s5507_s0 + $0x388] sm:$0xff]  ;;  %v411_v4 = vld [vmem:[%s5507_s0 + $0x380] sm:$0xff] }
  0xc4   :  { %2349 = vst.msk [vmem:[%s5509_s2 + $0x108] sm:$0xff] %vm2315_vm0, %v2060_v7  ;;  %2348 = vst.msk [vmem:[%s5509_s2 + $0x100] sm:$0xff] %vm2315_vm0, %v2059_v8 }
  0xc5   :  { %v765_v13 = vpop.permute.xlu1 %764  ;;  %v760_v14 = vpop.permute.xlu0 %759 }
  0xc6   :  { %v2062_v15 = vmul.f32 %v765_v13, %v46_v9  ;;  %v2061_v16 = vmul.f32 %v760_v14, %v45_v10  ;;  %1084 = vperm.xlu1 %2610, %v398_v11   ;;  %1079 = vperm.xlu0 %2609, %v397_v12   ;;  %v62_v9 = vld [vmem:[%s5508_s1 + $0x198] sm:$0xff]  ;;  %v61_v10 = vld [vmem:[%s5508_s1 + $0x190] sm:$0xff] }
  0xc7   :  { %v414_v11 = vld [vmem:[%s5507_s0 + $0x398] sm:$0xff]  ;;  %v413_v12 = vld [vmem:[%s5507_s0 + $0x390] sm:$0xff] }
  0xc8   :  { %2351 = vst.msk [vmem:[%s5509_s2 + $0x118] sm:$0xff] %vm2315_vm0, %v2062_v15  ;;  %2350 = vst.msk [vmem:[%s5509_s2 + $0x110] sm:$0xff] %vm2315_vm0, %v2061_v16 }
  0xc9   :  { %v775_v21 = vpop.permute.xlu1 %774  ;;  %v770_v22 = vpop.permute.xlu0 %769 }
  0xca   :  { %v2064_v23 = vmul.f32 %v775_v21, %v48_v17  ;;  %v2063_v24 = vmul.f32 %v770_v22, %v47_v18  ;;  %1094 = vperm.xlu1 %2610, %v400_v19   ;;  %1089 = vperm.xlu0 %2609, %v399_v20   ;;  %v64_v17 = vld [vmem:[%s5508_s1 + $0x1a8] sm:$0xff]  ;;  %v63_v18 = vld [vmem:[%s5508_s1 + $0x1a0] sm:$0xff] }
  0xcb   :  { %v416_v19 = vld [vmem:[%s5507_s0 + $0x3a8] sm:$0xff]  ;;  %v415_v20 = vld [vmem:[%s5507_s0 + $0x3a0] sm:$0xff] }
  0xcc   :  { %2353 = vst.msk [vmem:[%s5509_s2 + $0x128] sm:$0xff] %vm2315_vm0, %v2064_v23  ;;  %2352 = vst.msk [vmem:[%s5509_s2 + $0x120] sm:$0xff] %vm2315_vm0, %v2063_v24 }
  0xcd   :  { %v785_v29 = vpop.permute.xlu1 %784  ;;  %v780_v30 = vpop.permute.xlu0 %779 }
  0xce   :  { %v2066_v31 = vmul.f32 %v785_v29, %v50_v25  ;;  %v2065_v32 = vmul.f32 %v780_v30, %v49_v26  ;;  %1104 = vperm.xlu1 %2610, %v402_v27   ;;  %1099 = vperm.xlu0 %2609, %v401_v28   ;;  %v66_v25 = vld [vmem:[%s5508_s1 + $0x1b8] sm:$0xff]  ;;  %v65_v26 = vld [vmem:[%s5508_s1 + $0x1b0] sm:$0xff] }
  0xcf   :  { %v418_v27 = vld [vmem:[%s5507_s0 + $0x3b8] sm:$0xff]  ;;  %v417_v28 = vld [vmem:[%s5507_s0 + $0x3b0] sm:$0xff] }
  0xd0   :  { %2355 = vst.msk [vmem:[%s5509_s2 + $0x138] sm:$0xff] %vm2315_vm0, %v2066_v31  ;;  %2354 = vst.msk [vmem:[%s5509_s2 + $0x130] sm:$0xff] %vm2315_vm0, %v2065_v32 }
  0xd1   :  { %v795_v37 = vpop.permute.xlu1 %794  ;;  %v790_v38 = vpop.permute.xlu0 %789 }
  0xd2   :  { %v2068_v39 = vmul.f32 %v795_v37, %v52_v33  ;;  %v2067_v40 = vmul.f32 %v790_v38, %v51_v34  ;;  %1114 = vperm.xlu1 %2610, %v404_v35   ;;  %1109 = vperm.xlu0 %2609, %v403_v36   ;;  %v68_v33 = vld [vmem:[%s5508_s1 + $0x1c8] sm:$0xff]  ;;  %v67_v34 = vld [vmem:[%s5508_s1 + $0x1c0] sm:$0xff] }
  0xd3   :  { %v420_v35 = vld [vmem:[%s5507_s0 + $0x3c8] sm:$0xff]  ;;  %v419_v36 = vld [vmem:[%s5507_s0 + $0x3c0] sm:$0xff] }
  0xd4   :  { %2357 = vst.msk [vmem:[%s5509_s2 + $0x148] sm:$0xff] %vm2315_vm0, %v2068_v39  ;;  %2356 = vst.msk [vmem:[%s5509_s2 + $0x140] sm:$0xff] %vm2315_vm0, %v2067_v40 }
  0xd5   :  { %v805_v45 = vpop.permute.xlu1 %804  ;;  %v800_v46 = vpop.permute.xlu0 %799 }
  0xd6   :  { %v2070_v47 = vmul.f32 %v805_v45, %v54_v41  ;;  %v2069_v48 = vmul.f32 %v800_v46, %v53_v42  ;;  %1124 = vperm.xlu1 %2610, %v406_v43   ;;  %1119 = vperm.xlu0 %2609, %v405_v44   ;;  %v70_v41 = vld [vmem:[%s5508_s1 + $0x1d8] sm:$0xff]  ;;  %v69_v42 = vld [vmem:[%s5508_s1 + $0x1d0] sm:$0xff] }
  0xd7   :  { %v422_v43 = vld [vmem:[%s5507_s0 + $0x3d8] sm:$0xff]  ;;  %v421_v44 = vld [vmem:[%s5507_s0 + $0x3d0] sm:$0xff] }
  0xd8   :  { %2359 = vst.msk [vmem:[%s5509_s2 + $0x158] sm:$0xff] %vm2315_vm0, %v2070_v47  ;;  %2358 = vst.msk [vmem:[%s5509_s2 + $0x150] sm:$0xff] %vm2315_vm0, %v2069_v48 }
  0xd9   :  { %v815_v53 = vpop.permute.xlu1 %814  ;;  %v810_v54 = vpop.permute.xlu0 %809 }
  0xda   :  { %v2072_v55 = vmul.f32 %v815_v53, %v56_v49  ;;  %v2071_v56 = vmul.f32 %v810_v54, %v55_v50  ;;  %1134 = vperm.xlu1 %2610, %v408_v51   ;;  %1129 = vperm.xlu0 %2609, %v407_v52   ;;  %v72_v49 = vld [vmem:[%s5508_s1 + $0x1e8] sm:$0xff]  ;;  %v71_v50 = vld [vmem:[%s5508_s1 + $0x1e0] sm:$0xff] }
  0xdb   :  { %v424_v51 = vld [vmem:[%s5507_s0 + $0x3e8] sm:$0xff]  ;;  %v423_v52 = vld [vmem:[%s5507_s0 + $0x3e0] sm:$0xff] }
  0xdc   :  { %2361 = vst.msk [vmem:[%s5509_s2 + $0x168] sm:$0xff] %vm2315_vm0, %v2072_v55  ;;  %2360 = vst.msk [vmem:[%s5509_s2 + $0x160] sm:$0xff] %vm2315_vm0, %v2071_v56 }
  0xdd   :  { %v825_v61 = vpop.permute.xlu1 %824  ;;  %v820_v62 = vpop.permute.xlu0 %819 }
  0xde   :  { %v2074_v63 = vmul.f32 %v825_v61, %v58_v57  ;;  %v2073_v0 = vmul.f32 %v820_v62, %v57_v58  ;;  %1144 = vperm.xlu1 %2610, %v410_v59   ;;  %1139 = vperm.xlu0 %2609, %v409_v60   ;;  %v74_v57 = vld [vmem:[%s5508_s1 + $0x1f8] sm:$0xff]  ;;  %v73_v58 = vld [vmem:[%s5508_s1 + $0x1f0] sm:$0xff] }
  0xdf   :  { %v426_v59 = vld [vmem:[%s5507_s0 + $0x3f8] sm:$0xff]  ;;  %v425_v60 = vld [vmem:[%s5507_s0 + $0x3f0] sm:$0xff] }
  0xe0   :  { %2363 = vst.msk [vmem:[%s5509_s2 + $0x178] sm:$0xff] %vm2315_vm0, %v2074_v63  ;;  %2362 = vst.msk [vmem:[%s5509_s2 + $0x170] sm:$0xff] %vm2315_vm0, %v2073_v0 }
  0xe1   :  { %v835_v5 = vpop.permute.xlu1 %834  ;;  %v830_v6 = vpop.permute.xlu0 %829 }
  0xe2   :  { %v2076_v7 = vmul.f32 %v835_v5, %v60_v1  ;;  %v2075_v8 = vmul.f32 %v830_v6, %v59_v2  ;;  %1154 = vperm.xlu1 %2610, %v412_v3   ;;  %1149 = vperm.xlu0 %2609, %v411_v4   ;;  %v76_v1 = vld [vmem:[%s5508_s1 + $0x208] sm:$0xff]  ;;  %v75_v2 = vld [vmem:[%s5508_s1 + $0x200] sm:$0xff] }
  0xe3   :  { %v428_v3 = vld [vmem:[%s5507_s0 + $0x408] sm:$0xff]  ;;  %v427_v4 = vld [vmem:[%s5507_s0 + $0x400] sm:$0xff] }
  0xe4   :  { %2365 = vst.msk [vmem:[%s5509_s2 + $0x188] sm:$0xff] %vm2315_vm0, %v2076_v7  ;;  %2364 = vst.msk [vmem:[%s5509_s2 + $0x180] sm:$0xff] %vm2315_vm0, %v2075_v8 }
  0xe5   :  { %v845_v13 = vpop.permute.xlu1 %844  ;;  %v840_v14 = vpop.permute.xlu0 %839 }
  0xe6   :  { %v2078_v15 = vmul.f32 %v845_v13, %v62_v9  ;;  %v2077_v16 = vmul.f32 %v840_v14, %v61_v10  ;;  %1164 = vperm.xlu1 %2610, %v414_v11   ;;  %1159 = vperm.xlu0 %2609, %v413_v12   ;;  %v78_v9 = vld [vmem:[%s5508_s1 + $0x218] sm:$0xff]  ;;  %v77_v10 = vld [vmem:[%s5508_s1 + $0x210] sm:$0xff] }
  0xe7   :  { %v430_v11 = vld [vmem:[%s5507_s0 + $0x418] sm:$0xff]  ;;  %v429_v12 = vld [vmem:[%s5507_s0 + $0x410] sm:$0xff] }
  0xe8   :  { %2367 = vst.msk [vmem:[%s5509_s2 + $0x198] sm:$0xff] %vm2315_vm0, %v2078_v15  ;;  %2366 = vst.msk [vmem:[%s5509_s2 + $0x190] sm:$0xff] %vm2315_vm0, %v2077_v16 }
  0xe9   :  { %v855_v21 = vpop.permute.xlu1 %854  ;;  %v850_v22 = vpop.permute.xlu0 %849 }
  0xea   :  { %v2080_v23 = vmul.f32 %v855_v21, %v64_v17  ;;  %v2079_v24 = vmul.f32 %v850_v22, %v63_v18  ;;  %1174 = vperm.xlu1 %2610, %v416_v19   ;;  %1169 = vperm.xlu0 %2609, %v415_v20   ;;  %v80_v17 = vld [vmem:[%s5508_s1 + $0x228] sm:$0xff]  ;;  %v79_v18 = vld [vmem:[%s5508_s1 + $0x220] sm:$0xff] }
  0xeb   :  { %v432_v19 = vld [vmem:[%s5507_s0 + $0x428] sm:$0xff]  ;;  %v431_v20 = vld [vmem:[%s5507_s0 + $0x420] sm:$0xff] }
  0xec   :  { %2369 = vst.msk [vmem:[%s5509_s2 + $0x1a8] sm:$0xff] %vm2315_vm0, %v2080_v23  ;;  %2368 = vst.msk [vmem:[%s5509_s2 + $0x1a0] sm:$0xff] %vm2315_vm0, %v2079_v24 }
  0xed   :  { %v865_v29 = vpop.permute.xlu1 %864  ;;  %v860_v30 = vpop.permute.xlu0 %859 }
  0xee   :  { %v2082_v31 = vmul.f32 %v865_v29, %v66_v25  ;;  %v2081_v32 = vmul.f32 %v860_v30, %v65_v26  ;;  %1184 = vperm.xlu1 %2610, %v418_v27   ;;  %1179 = vperm.xlu0 %2609, %v417_v28   ;;  %v82_v25 = vld [vmem:[%s5508_s1 + $0x238] sm:$0xff]  ;;  %v81_v26 = vld [vmem:[%s5508_s1 + $0x230] sm:$0xff] }
  0xef   :  { %v434_v27 = vld [vmem:[%s5507_s0 + $0x438] sm:$0xff]  ;;  %v433_v28 = vld [vmem:[%s5507_s0 + $0x430] sm:$0xff] }
  0xf0   :  { %2371 = vst.msk [vmem:[%s5509_s2 + $0x1b8] sm:$0xff] %vm2315_vm0, %v2082_v31  ;;  %2370 = vst.msk [vmem:[%s5509_s2 + $0x1b0] sm:$0xff] %vm2315_vm0, %v2081_v32 }
  0xf1   :  { %v875_v37 = vpop.permute.xlu1 %874  ;;  %v870_v38 = vpop.permute.xlu0 %869 }
  0xf2   :  { %v2084_v39 = vmul.f32 %v875_v37, %v68_v33  ;;  %v2083_v40 = vmul.f32 %v870_v38, %v67_v34  ;;  %1194 = vperm.xlu1 %2610, %v420_v35   ;;  %1189 = vperm.xlu0 %2609, %v419_v36   ;;  %v84_v33 = vld [vmem:[%s5508_s1 + $0x248] sm:$0xff]  ;;  %v83_v34 = vld [vmem:[%s5508_s1 + $0x240] sm:$0xff] }
  0xf3   :  { %v436_v35 = vld [vmem:[%s5507_s0 + $0x448] sm:$0xff]  ;;  %v435_v36 = vld [vmem:[%s5507_s0 + $0x440] sm:$0xff] }
  0xf4   :  { %2373 = vst.msk [vmem:[%s5509_s2 + $0x1c8] sm:$0xff] %vm2315_vm0, %v2084_v39  ;;  %2372 = vst.msk [vmem:[%s5509_s2 + $0x1c0] sm:$0xff] %vm2315_vm0, %v2083_v40 }
  0xf5   :  { %v885_v45 = vpop.permute.xlu1 %884  ;;  %v880_v46 = vpop.permute.xlu0 %879 }
  0xf6   :  { %v2086_v47 = vmul.f32 %v885_v45, %v70_v41  ;;  %v2085_v48 = vmul.f32 %v880_v46, %v69_v42  ;;  %1204 = vperm.xlu1 %2610, %v422_v43   ;;  %1199 = vperm.xlu0 %2609, %v421_v44   ;;  %v86_v41 = vld [vmem:[%s5508_s1 + $0x258] sm:$0xff]  ;;  %v85_v42 = vld [vmem:[%s5508_s1 + $0x250] sm:$0xff] }
  0xf7   :  { %v438_v43 = vld [vmem:[%s5507_s0 + $0x458] sm:$0xff]  ;;  %v437_v44 = vld [vmem:[%s5507_s0 + $0x450] sm:$0xff] }
  0xf8   :  { %2375 = vst.msk [vmem:[%s5509_s2 + $0x1d8] sm:$0xff] %vm2315_vm0, %v2086_v47  ;;  %2374 = vst.msk [vmem:[%s5509_s2 + $0x1d0] sm:$0xff] %vm2315_vm0, %v2085_v48 }
  0xf9   :  { %v895_v53 = vpop.permute.xlu1 %894  ;;  %v890_v54 = vpop.permute.xlu0 %889 }
  0xfa   :  { %v2088_v55 = vmul.f32 %v895_v53, %v72_v49  ;;  %v2087_v56 = vmul.f32 %v890_v54, %v71_v50  ;;  %1214 = vperm.xlu1 %2610, %v424_v51   ;;  %1209 = vperm.xlu0 %2609, %v423_v52   ;;  %v88_v49 = vld [vmem:[%s5508_s1 + $0x268] sm:$0xff]  ;;  %v87_v50 = vld [vmem:[%s5508_s1 + $0x260] sm:$0xff] }
  0xfb   :  { %v440_v51 = vld [vmem:[%s5507_s0 + $0x468] sm:$0xff]  ;;  %v439_v52 = vld [vmem:[%s5507_s0 + $0x460] sm:$0xff] }
  0xfc   :  { %2377 = vst.msk [vmem:[%s5509_s2 + $0x1e8] sm:$0xff] %vm2315_vm0, %v2088_v55  ;;  %2376 = vst.msk [vmem:[%s5509_s2 + $0x1e0] sm:$0xff] %vm2315_vm0, %v2087_v56 }
  0xfd   :  { %v905_v61 = vpop.permute.xlu1 %904  ;;  %v900_v62 = vpop.permute.xlu0 %899 }
  0xfe   :  { %v2090_v63 = vmul.f32 %v905_v61, %v74_v57  ;;  %v2089_v0 = vmul.f32 %v900_v62, %v73_v58  ;;  %1224 = vperm.xlu1 %2610, %v426_v59   ;;  %1219 = vperm.xlu0 %2609, %v425_v60   ;;  %v90_v57 = vld [vmem:[%s5508_s1 + $0x278] sm:$0xff]  ;;  %v89_v58 = vld [vmem:[%s5508_s1 + $0x270] sm:$0xff] }
  0xff   :  { %v442_v59 = vld [vmem:[%s5507_s0 + $0x478] sm:$0xff]  ;;  %v441_v60 = vld [vmem:[%s5507_s0 + $0x470] sm:$0xff] }
 0x100   :  { %2379 = vst.msk [vmem:[%s5509_s2 + $0x1f8] sm:$0xff] %vm2315_vm0, %v2090_v63  ;;  %2378 = vst.msk [vmem:[%s5509_s2 + $0x1f0] sm:$0xff] %vm2315_vm0, %v2089_v0 }
 0x101   :  { %v915_v5 = vpop.permute.xlu1 %914  ;;  %v910_v6 = vpop.permute.xlu0 %909 }
 0x102   :  { %v2092_v7 = vmul.f32 %v915_v5, %v76_v1  ;;  %v2091_v8 = vmul.f32 %v910_v6, %v75_v2  ;;  %1234 = vperm.xlu1 %2610, %v428_v3   ;;  %1229 = vperm.xlu0 %2609, %v427_v4   ;;  %v92_v1 = vld [vmem:[%s5508_s1 + $0x288] sm:$0xff]  ;;  %v91_v2 = vld [vmem:[%s5508_s1 + $0x280] sm:$0xff] }
 0x103   :  { %v444_v3 = vld [vmem:[%s5507_s0 + $0x488] sm:$0xff]  ;;  %v443_v4 = vld [vmem:[%s5507_s0 + $0x480] sm:$0xff] }
 0x104   :  { %2381 = vst.msk [vmem:[%s5509_s2 + $0x208] sm:$0xff] %vm2315_vm0, %v2092_v7  ;;  %2380 = vst.msk [vmem:[%s5509_s2 + $0x200] sm:$0xff] %vm2315_vm0, %v2091_v8 }
 0x105   :  { %v925_v13 = vpop.permute.xlu1 %924  ;;  %v920_v14 = vpop.permute.xlu0 %919 }
 0x106   :  { %v2094_v15 = vmul.f32 %v925_v13, %v78_v9  ;;  %v2093_v16 = vmul.f32 %v920_v14, %v77_v10  ;;  %1244 = vperm.xlu1 %2610, %v430_v11   ;;  %1239 = vperm.xlu0 %2609, %v429_v12   ;;  %v94_v9 = vld [vmem:[%s5508_s1 + $0x298] sm:$0xff]  ;;  %v93_v10 = vld [vmem:[%s5508_s1 + $0x290] sm:$0xff] }
 0x107   :  { %v446_v11 = vld [vmem:[%s5507_s0 + $0x498] sm:$0xff]  ;;  %v445_v12 = vld [vmem:[%s5507_s0 + $0x490] sm:$0xff] }
 0x108   :  { %2383 = vst.msk [vmem:[%s5509_s2 + $0x218] sm:$0xff] %vm2315_vm0, %v2094_v15  ;;  %2382 = vst.msk [vmem:[%s5509_s2 + $0x210] sm:$0xff] %vm2315_vm0, %v2093_v16 }
 0x109   :  { %v935_v21 = vpop.permute.xlu1 %934  ;;  %v930_v22 = vpop.permute.xlu0 %929 }
 0x10a   :  { %v2096_v23 = vmul.f32 %v935_v21, %v80_v17  ;;  %v2095_v24 = vmul.f32 %v930_v22, %v79_v18  ;;  %1254 = vperm.xlu1 %2610, %v432_v19   ;;  %1249 = vperm.xlu0 %2609, %v431_v20   ;;  %v96_v17 = vld [vmem:[%s5508_s1 + $0x2a8] sm:$0xff]  ;;  %v95_v18 = vld [vmem:[%s5508_s1 + $0x2a0] sm:$0xff] }
 0x10b   :  { %v448_v19 = vld [vmem:[%s5507_s0 + $0x4a8] sm:$0xff]  ;;  %v447_v20 = vld [vmem:[%s5507_s0 + $0x4a0] sm:$0xff] }
 0x10c   :  { %2385 = vst.msk [vmem:[%s5509_s2 + $0x228] sm:$0xff] %vm2315_vm0, %v2096_v23  ;;  %2384 = vst.msk [vmem:[%s5509_s2 + $0x220] sm:$0xff] %vm2315_vm0, %v2095_v24 }
 0x10d   :  { %v945_v29 = vpop.permute.xlu1 %944  ;;  %v940_v30 = vpop.permute.xlu0 %939 }
 0x10e   :  { %v2098_v31 = vmul.f32 %v945_v29, %v82_v25  ;;  %v2097_v32 = vmul.f32 %v940_v30, %v81_v26  ;;  %1264 = vperm.xlu1 %2610, %v434_v27   ;;  %1259 = vperm.xlu0 %2609, %v433_v28   ;;  %v98_v25 = vld [vmem:[%s5508_s1 + $0x2b8] sm:$0xff]  ;;  %v97_v26 = vld [vmem:[%s5508_s1 + $0x2b0] sm:$0xff] }
 0x10f   :  { %v450_v27 = vld [vmem:[%s5507_s0 + $0x4b8] sm:$0xff]  ;;  %v449_v28 = vld [vmem:[%s5507_s0 + $0x4b0] sm:$0xff] }
 0x110   :  { %2387 = vst.msk [vmem:[%s5509_s2 + $0x238] sm:$0xff] %vm2315_vm0, %v2098_v31  ;;  %2386 = vst.msk [vmem:[%s5509_s2 + $0x230] sm:$0xff] %vm2315_vm0, %v2097_v32 }
 0x111   :  { %v955_v37 = vpop.permute.xlu1 %954  ;;  %v950_v38 = vpop.permute.xlu0 %949 }
 0x112   :  { %v2100_v39 = vmul.f32 %v955_v37, %v84_v33  ;;  %v2099_v40 = vmul.f32 %v950_v38, %v83_v34  ;;  %1274 = vperm.xlu1 %2610, %v436_v35   ;;  %1269 = vperm.xlu0 %2609, %v435_v36   ;;  %v100_v33 = vld [vmem:[%s5508_s1 + $0x2c8] sm:$0xff]  ;;  %v99_v34 = vld [vmem:[%s5508_s1 + $0x2c0] sm:$0xff] }
 0x113   :  { %v452_v35 = vld [vmem:[%s5507_s0 + $0x4c8] sm:$0xff]  ;;  %v451_v36 = vld [vmem:[%s5507_s0 + $0x4c0] sm:$0xff] }
 0x114   :  { %2389 = vst.msk [vmem:[%s5509_s2 + $0x248] sm:$0xff] %vm2315_vm0, %v2100_v39  ;;  %2388 = vst.msk [vmem:[%s5509_s2 + $0x240] sm:$0xff] %vm2315_vm0, %v2099_v40 }
 0x115   :  { %v965_v45 = vpop.permute.xlu1 %964  ;;  %v960_v46 = vpop.permute.xlu0 %959 }
 0x116   :  { %v2102_v47 = vmul.f32 %v965_v45, %v86_v41  ;;  %v2101_v48 = vmul.f32 %v960_v46, %v85_v42  ;;  %1284 = vperm.xlu1 %2610, %v438_v43   ;;  %1279 = vperm.xlu0 %2609, %v437_v44   ;;  %v102_v41 = vld [vmem:[%s5508_s1 + $0x2d8] sm:$0xff]  ;;  %v101_v42 = vld [vmem:[%s5508_s1 + $0x2d0] sm:$0xff] }
 0x117   :  { %v454_v43 = vld [vmem:[%s5507_s0 + $0x4d8] sm:$0xff]  ;;  %v453_v44 = vld [vmem:[%s5507_s0 + $0x4d0] sm:$0xff] }
 0x118   :  { %2391 = vst.msk [vmem:[%s5509_s2 + $0x258] sm:$0xff] %vm2315_vm0, %v2102_v47  ;;  %2390 = vst.msk [vmem:[%s5509_s2 + $0x250] sm:$0xff] %vm2315_vm0, %v2101_v48 }
 0x119   :  { %v975_v53 = vpop.permute.xlu1 %974  ;;  %v970_v54 = vpop.permute.xlu0 %969 }
 0x11a   :  { %v2104_v55 = vmul.f32 %v975_v53, %v88_v49  ;;  %v2103_v56 = vmul.f32 %v970_v54, %v87_v50  ;;  %1294 = vperm.xlu1 %2610, %v440_v51   ;;  %1289 = vperm.xlu0 %2609, %v439_v52   ;;  %v104_v49 = vld [vmem:[%s5508_s1 + $0x2e8] sm:$0xff]  ;;  %v103_v50 = vld [vmem:[%s5508_s1 + $0x2e0] sm:$0xff] }
 0x11b   :  { %v456_v51 = vld [vmem:[%s5507_s0 + $0x4e8] sm:$0xff]  ;;  %v455_v52 = vld [vmem:[%s5507_s0 + $0x4e0] sm:$0xff] }
 0x11c   :  { %2393 = vst.msk [vmem:[%s5509_s2 + $0x268] sm:$0xff] %vm2315_vm0, %v2104_v55  ;;  %2392 = vst.msk [vmem:[%s5509_s2 + $0x260] sm:$0xff] %vm2315_vm0, %v2103_v56 }
 0x11d   :  { %v985_v61 = vpop.permute.xlu1 %984  ;;  %v980_v62 = vpop.permute.xlu0 %979 }
 0x11e   :  { %v2106_v63 = vmul.f32 %v985_v61, %v90_v57  ;;  %v2105_v0 = vmul.f32 %v980_v62, %v89_v58  ;;  %1304 = vperm.xlu1 %2610, %v442_v59   ;;  %1299 = vperm.xlu0 %2609, %v441_v60   ;;  %v106_v57 = vld [vmem:[%s5508_s1 + $0x2f8] sm:$0xff]  ;;  %v105_v58 = vld [vmem:[%s5508_s1 + $0x2f0] sm:$0xff] }
 0x11f   :  { %v458_v59 = vld [vmem:[%s5507_s0 + $0x4f8] sm:$0xff]  ;;  %v457_v60 = vld [vmem:[%s5507_s0 + $0x4f0] sm:$0xff] }
 0x120   :  { %2395 = vst.msk [vmem:[%s5509_s2 + $0x278] sm:$0xff] %vm2315_vm0, %v2106_v63  ;;  %2394 = vst.msk [vmem:[%s5509_s2 + $0x270] sm:$0xff] %vm2315_vm0, %v2105_v0 }
 0x121   :  { %v995_v5 = vpop.permute.xlu1 %994  ;;  %v990_v6 = vpop.permute.xlu0 %989 }
 0x122   :  { %v2108_v7 = vmul.f32 %v995_v5, %v92_v1  ;;  %v2107_v8 = vmul.f32 %v990_v6, %v91_v2  ;;  %1314 = vperm.xlu1 %2610, %v444_v3   ;;  %1309 = vperm.xlu0 %2609, %v443_v4   ;;  %v108_v1 = vld [vmem:[%s5508_s1 + $0x308] sm:$0xff]  ;;  %v107_v2 = vld [vmem:[%s5508_s1 + $0x300] sm:$0xff] }
 0x123   :  { %v460_v3 = vld [vmem:[%s5507_s0 + $0x508] sm:$0xff]  ;;  %v459_v4 = vld [vmem:[%s5507_s0 + $0x500] sm:$0xff] }
 0x124   :  { %2397 = vst.msk [vmem:[%s5509_s2 + $0x288] sm:$0xff] %vm2315_vm0, %v2108_v7  ;;  %2396 = vst.msk [vmem:[%s5509_s2 + $0x280] sm:$0xff] %vm2315_vm0, %v2107_v8 }
 0x125   :  { %v1005_v13 = vpop.permute.xlu1 %1004  ;;  %v1000_v14 = vpop.permute.xlu0 %999 }
 0x126   :  { %v2110_v15 = vmul.f32 %v1005_v13, %v94_v9  ;;  %v2109_v16 = vmul.f32 %v1000_v14, %v93_v10  ;;  %1324 = vperm.xlu1 %2610, %v446_v11   ;;  %1319 = vperm.xlu0 %2609, %v445_v12   ;;  %v110_v9 = vld [vmem:[%s5508_s1 + $0x318] sm:$0xff]  ;;  %v109_v10 = vld [vmem:[%s5508_s1 + $0x310] sm:$0xff] }
 0x127   :  { %v462_v11 = vld [vmem:[%s5507_s0 + $0x518] sm:$0xff]  ;;  %v461_v12 = vld [vmem:[%s5507_s0 + $0x510] sm:$0xff] }
 0x128   :  { %2399 = vst.msk [vmem:[%s5509_s2 + $0x298] sm:$0xff] %vm2315_vm0, %v2110_v15  ;;  %2398 = vst.msk [vmem:[%s5509_s2 + $0x290] sm:$0xff] %vm2315_vm0, %v2109_v16 }
 0x129   :  { %v1015_v21 = vpop.permute.xlu1 %1014  ;;  %v1010_v22 = vpop.permute.xlu0 %1009 }
 0x12a   :  { %v2112_v23 = vmul.f32 %v1015_v21, %v96_v17  ;;  %v2111_v24 = vmul.f32 %v1010_v22, %v95_v18  ;;  %1334 = vperm.xlu1 %2610, %v448_v19   ;;  %1329 = vperm.xlu0 %2609, %v447_v20   ;;  %v112_v17 = vld [vmem:[%s5508_s1 + $0x328] sm:$0xff]  ;;  %v111_v18 = vld [vmem:[%s5508_s1 + $0x320] sm:$0xff] }
 0x12b   :  { %v464_v19 = vld [vmem:[%s5507_s0 + $0x528] sm:$0xff]  ;;  %v463_v20 = vld [vmem:[%s5507_s0 + $0x520] sm:$0xff] }
 0x12c   :  { %2401 = vst.msk [vmem:[%s5509_s2 + $0x2a8] sm:$0xff] %vm2315_vm0, %v2112_v23  ;;  %2400 = vst.msk [vmem:[%s5509_s2 + $0x2a0] sm:$0xff] %vm2315_vm0, %v2111_v24 }
 0x12d   :  { %v1025_v29 = vpop.permute.xlu1 %1024  ;;  %v1020_v30 = vpop.permute.xlu0 %1019 }
 0x12e   :  { %v2114_v31 = vmul.f32 %v1025_v29, %v98_v25  ;;  %v2113_v32 = vmul.f32 %v1020_v30, %v97_v26  ;;  %1344 = vperm.xlu1 %2610, %v450_v27   ;;  %1339 = vperm.xlu0 %2609, %v449_v28   ;;  %v114_v25 = vld [vmem:[%s5508_s1 + $0x338] sm:$0xff]  ;;  %v113_v26 = vld [vmem:[%s5508_s1 + $0x330] sm:$0xff] }
 0x12f   :  { %v466_v27 = vld [vmem:[%s5507_s0 + $0x538] sm:$0xff]  ;;  %v465_v28 = vld [vmem:[%s5507_s0 + $0x530] sm:$0xff] }
 0x130   :  { %2403 = vst.msk [vmem:[%s5509_s2 + $0x2b8] sm:$0xff] %vm2315_vm0, %v2114_v31  ;;  %2402 = vst.msk [vmem:[%s5509_s2 + $0x2b0] sm:$0xff] %vm2315_vm0, %v2113_v32 }
 0x131   :  { %v1035_v37 = vpop.permute.xlu1 %1034  ;;  %v1030_v38 = vpop.permute.xlu0 %1029 }
 0x132   :  { %v2116_v39 = vmul.f32 %v1035_v37, %v100_v33  ;;  %v2115_v40 = vmul.f32 %v1030_v38, %v99_v34  ;;  %1354 = vperm.xlu1 %2610, %v452_v35   ;;  %1349 = vperm.xlu0 %2609, %v451_v36   ;;  %v116_v33 = vld [vmem:[%s5508_s1 + $0x348] sm:$0xff]  ;;  %v115_v34 = vld [vmem:[%s5508_s1 + $0x340] sm:$0xff] }
 0x133   :  { %v468_v35 = vld [vmem:[%s5507_s0 + $0x548] sm:$0xff]  ;;  %v467_v36 = vld [vmem:[%s5507_s0 + $0x540] sm:$0xff] }
 0x134   :  { %2405 = vst.msk [vmem:[%s5509_s2 + $0x2c8] sm:$0xff] %vm2315_vm0, %v2116_v39  ;;  %2404 = vst.msk [vmem:[%s5509_s2 + $0x2c0] sm:$0xff] %vm2315_vm0, %v2115_v40 }
 0x135   :  { %v1045_v45 = vpop.permute.xlu1 %1044  ;;  %v1040_v46 = vpop.permute.xlu0 %1039 }
 0x136   :  { %v2118_v47 = vmul.f32 %v1045_v45, %v102_v41  ;;  %v2117_v48 = vmul.f32 %v1040_v46, %v101_v42  ;;  %1364 = vperm.xlu1 %2610, %v454_v43   ;;  %1359 = vperm.xlu0 %2609, %v453_v44   ;;  %v118_v41 = vld [vmem:[%s5508_s1 + $0x358] sm:$0xff]  ;;  %v117_v42 = vld [vmem:[%s5508_s1 + $0x350] sm:$0xff] }
 0x137   :  { %v470_v43 = vld [vmem:[%s5507_s0 + $0x558] sm:$0xff]  ;;  %v469_v44 = vld [vmem:[%s5507_s0 + $0x550] sm:$0xff] }
 0x138   :  { %2407 = vst.msk [vmem:[%s5509_s2 + $0x2d8] sm:$0xff] %vm2315_vm0, %v2118_v47  ;;  %2406 = vst.msk [vmem:[%s5509_s2 + $0x2d0] sm:$0xff] %vm2315_vm0, %v2117_v48 }
 0x139   :  { %v1055_v53 = vpop.permute.xlu1 %1054  ;;  %v1050_v54 = vpop.permute.xlu0 %1049 }
 0x13a   :  { %v2120_v55 = vmul.f32 %v1055_v53, %v104_v49  ;;  %v2119_v56 = vmul.f32 %v1050_v54, %v103_v50  ;;  %1374 = vperm.xlu1 %2610, %v456_v51   ;;  %1369 = vperm.xlu0 %2609, %v455_v52   ;;  %v120_v49 = vld [vmem:[%s5508_s1 + $0x368] sm:$0xff]  ;;  %v119_v50 = vld [vmem:[%s5508_s1 + $0x360] sm:$0xff] }
 0x13b   :  { %v472_v51 = vld [vmem:[%s5507_s0 + $0x568] sm:$0xff]  ;;  %v471_v52 = vld [vmem:[%s5507_s0 + $0x560] sm:$0xff] }
 0x13c   :  { %2409 = vst.msk [vmem:[%s5509_s2 + $0x2e8] sm:$0xff] %vm2315_vm0, %v2120_v55  ;;  %2408 = vst.msk [vmem:[%s5509_s2 + $0x2e0] sm:$0xff] %vm2315_vm0, %v2119_v56 }
 0x13d   :  { %v1065_v61 = vpop.permute.xlu1 %1064  ;;  %v1060_v62 = vpop.permute.xlu0 %1059 }
 0x13e   :  { %v2122_v63 = vmul.f32 %v1065_v61, %v106_v57  ;;  %v2121_v0 = vmul.f32 %v1060_v62, %v105_v58  ;;  %1384 = vperm.xlu1 %2610, %v458_v59   ;;  %1379 = vperm.xlu0 %2609, %v457_v60   ;;  %v122_v57 = vld [vmem:[%s5508_s1 + $0x378] sm:$0xff]  ;;  %v121_v58 = vld [vmem:[%s5508_s1 + $0x370] sm:$0xff] }
 0x13f   :  { %v474_v59 = vld [vmem:[%s5507_s0 + $0x578] sm:$0xff]  ;;  %v473_v60 = vld [vmem:[%s5507_s0 + $0x570] sm:$0xff] }
 0x140   :  { %2411 = vst.msk [vmem:[%s5509_s2 + $0x2f8] sm:$0xff] %vm2315_vm0, %v2122_v63  ;;  %2410 = vst.msk [vmem:[%s5509_s2 + $0x2f0] sm:$0xff] %vm2315_vm0, %v2121_v0 }
 0x141   :  { %v1075_v5 = vpop.permute.xlu1 %1074  ;;  %v1070_v6 = vpop.permute.xlu0 %1069 }
 0x142   :  { %v2124_v7 = vmul.f32 %v1075_v5, %v108_v1  ;;  %v2123_v8 = vmul.f32 %v1070_v6, %v107_v2  ;;  %1394 = vperm.xlu1 %2610, %v460_v3   ;;  %1389 = vperm.xlu0 %2609, %v459_v4   ;;  %v124_v1 = vld [vmem:[%s5508_s1 + $0x388] sm:$0xff]  ;;  %v123_v2 = vld [vmem:[%s5508_s1 + $0x380] sm:$0xff] }
 0x143   :  { %v476_v3 = vld [vmem:[%s5507_s0 + $0x588] sm:$0xff]  ;;  %v475_v4 = vld [vmem:[%s5507_s0 + $0x580] sm:$0xff] }
 0x144   :  { %2413 = vst.msk [vmem:[%s5509_s2 + $0x308] sm:$0xff] %vm2315_vm0, %v2124_v7  ;;  %2412 = vst.msk [vmem:[%s5509_s2 + $0x300] sm:$0xff] %vm2315_vm0, %v2123_v8 }
 0x145   :  { %v1085_v13 = vpop.permute.xlu1 %1084  ;;  %v1080_v14 = vpop.permute.xlu0 %1079 }
 0x146   :  { %v2126_v15 = vmul.f32 %v1085_v13, %v110_v9  ;;  %v2125_v16 = vmul.f32 %v1080_v14, %v109_v10  ;;  %1404 = vperm.xlu1 %2610, %v462_v11   ;;  %1399 = vperm.xlu0 %2609, %v461_v12   ;;  %v126_v9 = vld [vmem:[%s5508_s1 + $0x398] sm:$0xff]  ;;  %v125_v10 = vld [vmem:[%s5508_s1 + $0x390] sm:$0xff] }
 0x147   :  { %v478_v11 = vld [vmem:[%s5507_s0 + $0x598] sm:$0xff]  ;;  %v477_v12 = vld [vmem:[%s5507_s0 + $0x590] sm:$0xff] }
 0x148   :  { %2415 = vst.msk [vmem:[%s5509_s2 + $0x318] sm:$0xff] %vm2315_vm0, %v2126_v15  ;;  %2414 = vst.msk [vmem:[%s5509_s2 + $0x310] sm:$0xff] %vm2315_vm0, %v2125_v16 }
 0x149   :  { %v1095_v21 = vpop.permute.xlu1 %1094  ;;  %v1090_v22 = vpop.permute.xlu0 %1089 }
 0x14a   :  { %v2128_v23 = vmul.f32 %v1095_v21, %v112_v17  ;;  %v2127_v24 = vmul.f32 %v1090_v22, %v111_v18  ;;  %1414 = vperm.xlu1 %2610, %v464_v19   ;;  %1409 = vperm.xlu0 %2609, %v463_v20   ;;  %v128_v17 = vld [vmem:[%s5508_s1 + $0x3a8] sm:$0xff]  ;;  %v127_v18 = vld [vmem:[%s5508_s1 + $0x3a0] sm:$0xff] }
 0x14b   :  { %v480_v19 = vld [vmem:[%s5507_s0 + $0x5a8] sm:$0xff]  ;;  %v479_v20 = vld [vmem:[%s5507_s0 + $0x5a0] sm:$0xff] }
 0x14c   :  { %2417 = vst.msk [vmem:[%s5509_s2 + $0x328] sm:$0xff] %vm2315_vm0, %v2128_v23  ;;  %2416 = vst.msk [vmem:[%s5509_s2 + $0x320] sm:$0xff] %vm2315_vm0, %v2127_v24 }
 0x14d   :  { %v1105_v29 = vpop.permute.xlu1 %1104  ;;  %v1100_v30 = vpop.permute.xlu0 %1099 }
 0x14e   :  { %v2130_v31 = vmul.f32 %v1105_v29, %v114_v25  ;;  %v2129_v32 = vmul.f32 %v1100_v30, %v113_v26  ;;  %1424 = vperm.xlu1 %2610, %v466_v27   ;;  %1419 = vperm.xlu0 %2609, %v465_v28   ;;  %v130_v25 = vld [vmem:[%s5508_s1 + $0x3b8] sm:$0xff]  ;;  %v129_v26 = vld [vmem:[%s5508_s1 + $0x3b0] sm:$0xff] }
 0x14f   :  { %v482_v27 = vld [vmem:[%s5507_s0 + $0x5b8] sm:$0xff]  ;;  %v481_v28 = vld [vmem:[%s5507_s0 + $0x5b0] sm:$0xff] }
 0x150   :  { %2419 = vst.msk [vmem:[%s5509_s2 + $0x338] sm:$0xff] %vm2315_vm0, %v2130_v31  ;;  %2418 = vst.msk [vmem:[%s5509_s2 + $0x330] sm:$0xff] %vm2315_vm0, %v2129_v32 }
 0x151   :  { %v1115_v37 = vpop.permute.xlu1 %1114  ;;  %v1110_v38 = vpop.permute.xlu0 %1109 }
 0x152   :  { %v2132_v39 = vmul.f32 %v1115_v37, %v116_v33  ;;  %v2131_v40 = vmul.f32 %v1110_v38, %v115_v34  ;;  %1434 = vperm.xlu1 %2610, %v468_v35   ;;  %1429 = vperm.xlu0 %2609, %v467_v36   ;;  %v132_v33 = vld [vmem:[%s5508_s1 + $0x3c8] sm:$0xff]  ;;  %v131_v34 = vld [vmem:[%s5508_s1 + $0x3c0] sm:$0xff] }
 0x153   :  { %v484_v35 = vld [vmem:[%s5507_s0 + $0x5c8] sm:$0xff]  ;;  %v483_v36 = vld [vmem:[%s5507_s0 + $0x5c0] sm:$0xff] }
 0x154   :  { %2421 = vst.msk [vmem:[%s5509_s2 + $0x348] sm:$0xff] %vm2315_vm0, %v2132_v39  ;;  %2420 = vst.msk [vmem:[%s5509_s2 + $0x340] sm:$0xff] %vm2315_vm0, %v2131_v40 }
 0x155   :  { %v1125_v45 = vpop.permute.xlu1 %1124  ;;  %v1120_v46 = vpop.permute.xlu0 %1119 }
 0x156   :  { %v2134_v47 = vmul.f32 %v1125_v45, %v118_v41  ;;  %v2133_v48 = vmul.f32 %v1120_v46, %v117_v42  ;;  %1444 = vperm.xlu1 %2610, %v470_v43   ;;  %1439 = vperm.xlu0 %2609, %v469_v44   ;;  %v134_v41 = vld [vmem:[%s5508_s1 + $0x3d8] sm:$0xff]  ;;  %v133_v42 = vld [vmem:[%s5508_s1 + $0x3d0] sm:$0xff] }
 0x157   :  { %v486_v43 = vld [vmem:[%s5507_s0 + $0x5d8] sm:$0xff]  ;;  %v485_v44 = vld [vmem:[%s5507_s0 + $0x5d0] sm:$0xff] }
 0x158   :  { %2423 = vst.msk [vmem:[%s5509_s2 + $0x358] sm:$0xff] %vm2315_vm0, %v2134_v47  ;;  %2422 = vst.msk [vmem:[%s5509_s2 + $0x350] sm:$0xff] %vm2315_vm0, %v2133_v48 }
 0x159   :  { %v1135_v53 = vpop.permute.xlu1 %1134  ;;  %v1130_v54 = vpop.permute.xlu0 %1129 }
 0x15a   :  { %v2136_v55 = vmul.f32 %v1135_v53, %v120_v49  ;;  %v2135_v56 = vmul.f32 %v1130_v54, %v119_v50  ;;  %1454 = vperm.xlu1 %2610, %v472_v51   ;;  %1449 = vperm.xlu0 %2609, %v471_v52   ;;  %v136_v49 = vld [vmem:[%s5508_s1 + $0x3e8] sm:$0xff]  ;;  %v135_v50 = vld [vmem:[%s5508_s1 + $0x3e0] sm:$0xff] }
 0x15b   :  { %v488_v51 = vld [vmem:[%s5507_s0 + $0x5e8] sm:$0xff]  ;;  %v487_v52 = vld [vmem:[%s5507_s0 + $0x5e0] sm:$0xff] }
 0x15c   :  { %2425 = vst.msk [vmem:[%s5509_s2 + $0x368] sm:$0xff] %vm2315_vm0, %v2136_v55  ;;  %2424 = vst.msk [vmem:[%s5509_s2 + $0x360] sm:$0xff] %vm2315_vm0, %v2135_v56 }
 0x15d   :  { %v1145_v61 = vpop.permute.xlu1 %1144  ;;  %v1140_v62 = vpop.permute.xlu0 %1139 }
 0x15e   :  { %v2138_v63 = vmul.f32 %v1145_v61, %v122_v57  ;;  %v2137_v0 = vmul.f32 %v1140_v62, %v121_v58  ;;  %1464 = vperm.xlu1 %2610, %v474_v59   ;;  %1459 = vperm.xlu0 %2609, %v473_v60   ;;  %v138_v57 = vld [vmem:[%s5508_s1 + $0x3f8] sm:$0xff]  ;;  %v137_v58 = vld [vmem:[%s5508_s1 + $0x3f0] sm:$0xff] }
 0x15f   :  { %v490_v59 = vld [vmem:[%s5507_s0 + $0x5f8] sm:$0xff]  ;;  %v489_v60 = vld [vmem:[%s5507_s0 + $0x5f0] sm:$0xff] }
 0x160   :  { %2427 = vst.msk [vmem:[%s5509_s2 + $0x378] sm:$0xff] %vm2315_vm0, %v2138_v63  ;;  %2426 = vst.msk [vmem:[%s5509_s2 + $0x370] sm:$0xff] %vm2315_vm0, %v2137_v0 }
 0x161   :  { %v1155_v5 = vpop.permute.xlu1 %1154  ;;  %v1150_v6 = vpop.permute.xlu0 %1149 }
 0x162   :  { %v2140_v7 = vmul.f32 %v1155_v5, %v124_v1  ;;  %v2139_v8 = vmul.f32 %v1150_v6, %v123_v2  ;;  %1474 = vperm.xlu1 %2610, %v476_v3   ;;  %1469 = vperm.xlu0 %2609, %v475_v4   ;;  %v140_v1 = vld [vmem:[%s5508_s1 + $0x408] sm:$0xff]  ;;  %v139_v2 = vld [vmem:[%s5508_s1 + $0x400] sm:$0xff] }
 0x163   :  { %v492_v3 = vld [vmem:[%s5507_s0 + $0x608] sm:$0xff]  ;;  %v491_v4 = vld [vmem:[%s5507_s0 + $0x600] sm:$0xff] }
 0x164   :  { %2429 = vst.msk [vmem:[%s5509_s2 + $0x388] sm:$0xff] %vm2315_vm0, %v2140_v7  ;;  %2428 = vst.msk [vmem:[%s5509_s2 + $0x380] sm:$0xff] %vm2315_vm0, %v2139_v8 }
 0x165   :  { %v1165_v13 = vpop.permute.xlu1 %1164  ;;  %v1160_v14 = vpop.permute.xlu0 %1159 }
 0x166   :  { %v2142_v15 = vmul.f32 %v1165_v13, %v126_v9  ;;  %v2141_v16 = vmul.f32 %v1160_v14, %v125_v10  ;;  %1484 = vperm.xlu1 %2610, %v478_v11   ;;  %1479 = vperm.xlu0 %2609, %v477_v12   ;;  %v142_v9 = vld [vmem:[%s5508_s1 + $0x418] sm:$0xff]  ;;  %v141_v10 = vld [vmem:[%s5508_s1 + $0x410] sm:$0xff] }
 0x167   :  { %v494_v11 = vld [vmem:[%s5507_s0 + $0x618] sm:$0xff]  ;;  %v493_v12 = vld [vmem:[%s5507_s0 + $0x610] sm:$0xff] }
 0x168   :  { %2431 = vst.msk [vmem:[%s5509_s2 + $0x398] sm:$0xff] %vm2315_vm0, %v2142_v15  ;;  %2430 = vst.msk [vmem:[%s5509_s2 + $0x390] sm:$0xff] %vm2315_vm0, %v2141_v16 }
 0x169   :  { %v1175_v21 = vpop.permute.xlu1 %1174  ;;  %v1170_v22 = vpop.permute.xlu0 %1169 }
 0x16a   :  { %v2144_v23 = vmul.f32 %v1175_v21, %v128_v17  ;;  %v2143_v24 = vmul.f32 %v1170_v22, %v127_v18  ;;  %1494 = vperm.xlu1 %2610, %v480_v19   ;;  %1489 = vperm.xlu0 %2609, %v479_v20   ;;  %v144_v17 = vld [vmem:[%s5508_s1 + $0x428] sm:$0xff]  ;;  %v143_v18 = vld [vmem:[%s5508_s1 + $0x420] sm:$0xff] }
 0x16b   :  { %v496_v19 = vld [vmem:[%s5507_s0 + $0x628] sm:$0xff]  ;;  %v495_v20 = vld [vmem:[%s5507_s0 + $0x620] sm:$0xff] }
 0x16c   :  { %2433 = vst.msk [vmem:[%s5509_s2 + $0x3a8] sm:$0xff] %vm2315_vm0, %v2144_v23  ;;  %2432 = vst.msk [vmem:[%s5509_s2 + $0x3a0] sm:$0xff] %vm2315_vm0, %v2143_v24 }
 0x16d   :  { %v1185_v29 = vpop.permute.xlu1 %1184  ;;  %v1180_v30 = vpop.permute.xlu0 %1179 }
 0x16e   :  { %v2146_v31 = vmul.f32 %v1185_v29, %v130_v25  ;;  %v2145_v32 = vmul.f32 %v1180_v30, %v129_v26  ;;  %1504 = vperm.xlu1 %2610, %v482_v27   ;;  %1499 = vperm.xlu0 %2609, %v481_v28   ;;  %v146_v25 = vld [vmem:[%s5508_s1 + $0x438] sm:$0xff]  ;;  %v145_v26 = vld [vmem:[%s5508_s1 + $0x430] sm:$0xff] }
 0x16f   :  { %v498_v27 = vld [vmem:[%s5507_s0 + $0x638] sm:$0xff]  ;;  %v497_v28 = vld [vmem:[%s5507_s0 + $0x630] sm:$0xff] }
 0x170   :  { %2435 = vst.msk [vmem:[%s5509_s2 + $0x3b8] sm:$0xff] %vm2315_vm0, %v2146_v31  ;;  %2434 = vst.msk [vmem:[%s5509_s2 + $0x3b0] sm:$0xff] %vm2315_vm0, %v2145_v32 }
 0x171   :  { %v1195_v37 = vpop.permute.xlu1 %1194  ;;  %v1190_v38 = vpop.permute.xlu0 %1189 }
 0x172   :  { %v2148_v39 = vmul.f32 %v1195_v37, %v132_v33  ;;  %v2147_v40 = vmul.f32 %v1190_v38, %v131_v34  ;;  %1514 = vperm.xlu1 %2610, %v484_v35   ;;  %1509 = vperm.xlu0 %2609, %v483_v36   ;;  %v148_v33 = vld [vmem:[%s5508_s1 + $0x448] sm:$0xff]  ;;  %v147_v34 = vld [vmem:[%s5508_s1 + $0x440] sm:$0xff] }
 0x173   :  { %v500_v35 = vld [vmem:[%s5507_s0 + $0x648] sm:$0xff]  ;;  %v499_v36 = vld [vmem:[%s5507_s0 + $0x640] sm:$0xff] }
 0x174   :  { %2437 = vst.msk [vmem:[%s5509_s2 + $0x3c8] sm:$0xff] %vm2315_vm0, %v2148_v39  ;;  %2436 = vst.msk [vmem:[%s5509_s2 + $0x3c0] sm:$0xff] %vm2315_vm0, %v2147_v40 }
 0x175   :  { %v1205_v45 = vpop.permute.xlu1 %1204  ;;  %v1200_v46 = vpop.permute.xlu0 %1199 }
 0x176   :  { %v2150_v47 = vmul.f32 %v1205_v45, %v134_v41  ;;  %v2149_v48 = vmul.f32 %v1200_v46, %v133_v42  ;;  %1524 = vperm.xlu1 %2610, %v486_v43   ;;  %1519 = vperm.xlu0 %2609, %v485_v44   ;;  %v150_v41 = vld [vmem:[%s5508_s1 + $0x458] sm:$0xff]  ;;  %v149_v42 = vld [vmem:[%s5508_s1 + $0x450] sm:$0xff] }
 0x177   :  { %v502_v43 = vld [vmem:[%s5507_s0 + $0x658] sm:$0xff]  ;;  %v501_v44 = vld [vmem:[%s5507_s0 + $0x650] sm:$0xff] }
 0x178   :  { %2439 = vst.msk [vmem:[%s5509_s2 + $0x3d8] sm:$0xff] %vm2315_vm0, %v2150_v47  ;;  %2438 = vst.msk [vmem:[%s5509_s2 + $0x3d0] sm:$0xff] %vm2315_vm0, %v2149_v48 }
 0x179   :  { %v1215_v53 = vpop.permute.xlu1 %1214  ;;  %v1210_v54 = vpop.permute.xlu0 %1209 }
 0x17a   :  { %v2152_v55 = vmul.f32 %v1215_v53, %v136_v49  ;;  %v2151_v56 = vmul.f32 %v1210_v54, %v135_v50  ;;  %1534 = vperm.xlu1 %2610, %v488_v51   ;;  %1529 = vperm.xlu0 %2609, %v487_v52   ;;  %v152_v49 = vld [vmem:[%s5508_s1 + $0x468] sm:$0xff]  ;;  %v151_v50 = vld [vmem:[%s5508_s1 + $0x460] sm:$0xff] }
 0x17b   :  { %v504_v51 = vld [vmem:[%s5507_s0 + $0x668] sm:$0xff]  ;;  %v503_v52 = vld [vmem:[%s5507_s0 + $0x660] sm:$0xff] }
 0x17c   :  { %2441 = vst.msk [vmem:[%s5509_s2 + $0x3e8] sm:$0xff] %vm2315_vm0, %v2152_v55  ;;  %2440 = vst.msk [vmem:[%s5509_s2 + $0x3e0] sm:$0xff] %vm2315_vm0, %v2151_v56 }
 0x17d   :  { %v1225_v61 = vpop.permute.xlu1 %1224  ;;  %v1220_v62 = vpop.permute.xlu0 %1219 }
 0x17e   :  { %v2154_v63 = vmul.f32 %v1225_v61, %v138_v57  ;;  %v2153_v0 = vmul.f32 %v1220_v62, %v137_v58  ;;  %1544 = vperm.xlu1 %2610, %v490_v59   ;;  %1539 = vperm.xlu0 %2609, %v489_v60   ;;  %v154_v57 = vld [vmem:[%s5508_s1 + $0x478] sm:$0xff]  ;;  %v153_v58 = vld [vmem:[%s5508_s1 + $0x470] sm:$0xff] }
 0x17f   :  { %v506_v59 = vld [vmem:[%s5507_s0 + $0x678] sm:$0xff]  ;;  %v505_v60 = vld [vmem:[%s5507_s0 + $0x670] sm:$0xff] }
 0x180   :  { %2443 = vst.msk [vmem:[%s5509_s2 + $0x3f8] sm:$0xff] %vm2315_vm0, %v2154_v63  ;;  %2442 = vst.msk [vmem:[%s5509_s2 + $0x3f0] sm:$0xff] %vm2315_vm0, %v2153_v0 }
 0x181   :  { %v1235_v5 = vpop.permute.xlu1 %1234  ;;  %v1230_v6 = vpop.permute.xlu0 %1229 }
 0x182   :  { %v2156_v7 = vmul.f32 %v1235_v5, %v140_v1  ;;  %v2155_v8 = vmul.f32 %v1230_v6, %v139_v2  ;;  %1554 = vperm.xlu1 %2610, %v492_v3   ;;  %1549 = vperm.xlu0 %2609, %v491_v4   ;;  %v156_v1 = vld [vmem:[%s5508_s1 + $0x488] sm:$0xff]  ;;  %v155_v2 = vld [vmem:[%s5508_s1 + $0x480] sm:$0xff] }
 0x183   :  { %v508_v3 = vld [vmem:[%s5507_s0 + $0x688] sm:$0xff]  ;;  %v507_v4 = vld [vmem:[%s5507_s0 + $0x680] sm:$0xff] }
 0x184   :  { %2445 = vst.msk [vmem:[%s5509_s2 + $0x408] sm:$0xff] %vm2315_vm0, %v2156_v7  ;;  %2444 = vst.msk [vmem:[%s5509_s2 + $0x400] sm:$0xff] %vm2315_vm0, %v2155_v8 }
 0x185   :  { %v1245_v13 = vpop.permute.xlu1 %1244  ;;  %v1240_v14 = vpop.permute.xlu0 %1239 }
 0x186   :  { %v2158_v15 = vmul.f32 %v1245_v13, %v142_v9  ;;  %v2157_v16 = vmul.f32 %v1240_v14, %v141_v10  ;;  %1564 = vperm.xlu1 %2610, %v494_v11   ;;  %1559 = vperm.xlu0 %2609, %v493_v12   ;;  %v158_v9 = vld [vmem:[%s5508_s1 + $0x498] sm:$0xff]  ;;  %v157_v10 = vld [vmem:[%s5508_s1 + $0x490] sm:$0xff] }
 0x187   :  { %v510_v11 = vld [vmem:[%s5507_s0 + $0x698] sm:$0xff]  ;;  %v509_v12 = vld [vmem:[%s5507_s0 + $0x690] sm:$0xff] }
 0x188   :  { %2447 = vst.msk [vmem:[%s5509_s2 + $0x418] sm:$0xff] %vm2315_vm0, %v2158_v15  ;;  %2446 = vst.msk [vmem:[%s5509_s2 + $0x410] sm:$0xff] %vm2315_vm0, %v2157_v16 }
 0x189   :  { %v1255_v21 = vpop.permute.xlu1 %1254  ;;  %v1250_v22 = vpop.permute.xlu0 %1249 }
 0x18a   :  { %v2160_v23 = vmul.f32 %v1255_v21, %v144_v17  ;;  %v2159_v24 = vmul.f32 %v1250_v22, %v143_v18  ;;  %1574 = vperm.xlu1 %2610, %v496_v19   ;;  %1569 = vperm.xlu0 %2609, %v495_v20   ;;  %v160_v17 = vld [vmem:[%s5508_s1 + $0x4a8] sm:$0xff]  ;;  %v159_v18 = vld [vmem:[%s5508_s1 + $0x4a0] sm:$0xff] }
 0x18b   :  { %v512_v19 = vld [vmem:[%s5507_s0 + $0x6a8] sm:$0xff]  ;;  %v511_v20 = vld [vmem:[%s5507_s0 + $0x6a0] sm:$0xff] }
 0x18c   :  { %2449 = vst.msk [vmem:[%s5509_s2 + $0x428] sm:$0xff] %vm2315_vm0, %v2160_v23  ;;  %2448 = vst.msk [vmem:[%s5509_s2 + $0x420] sm:$0xff] %vm2315_vm0, %v2159_v24 }
 0x18d   :  { %v1265_v29 = vpop.permute.xlu1 %1264  ;;  %v1260_v30 = vpop.permute.xlu0 %1259 }
 0x18e   :  { %v2162_v31 = vmul.f32 %v1265_v29, %v146_v25  ;;  %v2161_v32 = vmul.f32 %v1260_v30, %v145_v26  ;;  %1584 = vperm.xlu1 %2610, %v498_v27   ;;  %1579 = vperm.xlu0 %2609, %v497_v28   ;;  %v162_v25 = vld [vmem:[%s5508_s1 + $0x4b8] sm:$0xff]  ;;  %v161_v26 = vld [vmem:[%s5508_s1 + $0x4b0] sm:$0xff] }
 0x18f   :  { %v514_v27 = vld [vmem:[%s5507_s0 + $0x6b8] sm:$0xff]  ;;  %v513_v28 = vld [vmem:[%s5507_s0 + $0x6b0] sm:$0xff] }
 0x190   :  { %2451 = vst.msk [vmem:[%s5509_s2 + $0x438] sm:$0xff] %vm2315_vm0, %v2162_v31  ;;  %2450 = vst.msk [vmem:[%s5509_s2 + $0x430] sm:$0xff] %vm2315_vm0, %v2161_v32 }
 0x191   :  { %v1275_v37 = vpop.permute.xlu1 %1274  ;;  %v1270_v38 = vpop.permute.xlu0 %1269 }
 0x192   :  { %v2164_v39 = vmul.f32 %v1275_v37, %v148_v33  ;;  %v2163_v40 = vmul.f32 %v1270_v38, %v147_v34  ;;  %1594 = vperm.xlu1 %2610, %v500_v35   ;;  %1589 = vperm.xlu0 %2609, %v499_v36   ;;  %v164_v33 = vld [vmem:[%s5508_s1 + $0x4c8] sm:$0xff]  ;;  %v163_v34 = vld [vmem:[%s5508_s1 + $0x4c0] sm:$0xff] }
 0x193   :  { %v516_v35 = vld [vmem:[%s5507_s0 + $0x6c8] sm:$0xff]  ;;  %v515_v36 = vld [vmem:[%s5507_s0 + $0x6c0] sm:$0xff] }
 0x194   :  { %2453 = vst.msk [vmem:[%s5509_s2 + $0x448] sm:$0xff] %vm2315_vm0, %v2164_v39  ;;  %2452 = vst.msk [vmem:[%s5509_s2 + $0x440] sm:$0xff] %vm2315_vm0, %v2163_v40 }
 0x195   :  { %v1285_v45 = vpop.permute.xlu1 %1284  ;;  %v1280_v46 = vpop.permute.xlu0 %1279 }
 0x196   :  { %v2166_v47 = vmul.f32 %v1285_v45, %v150_v41  ;;  %v2165_v48 = vmul.f32 %v1280_v46, %v149_v42  ;;  %1604 = vperm.xlu1 %2610, %v502_v43   ;;  %1599 = vperm.xlu0 %2609, %v501_v44   ;;  %v166_v41 = vld [vmem:[%s5508_s1 + $0x4d8] sm:$0xff]  ;;  %v165_v42 = vld [vmem:[%s5508_s1 + $0x4d0] sm:$0xff] }
 0x197   :  { %v518_v43 = vld [vmem:[%s5507_s0 + $0x6d8] sm:$0xff]  ;;  %v517_v44 = vld [vmem:[%s5507_s0 + $0x6d0] sm:$0xff] }
 0x198   :  { %2455 = vst.msk [vmem:[%s5509_s2 + $0x458] sm:$0xff] %vm2315_vm0, %v2166_v47  ;;  %2454 = vst.msk [vmem:[%s5509_s2 + $0x450] sm:$0xff] %vm2315_vm0, %v2165_v48 }
 0x199   :  { %v1295_v53 = vpop.permute.xlu1 %1294  ;;  %v1290_v54 = vpop.permute.xlu0 %1289 }
 0x19a   :  { %v2168_v55 = vmul.f32 %v1295_v53, %v152_v49  ;;  %v2167_v56 = vmul.f32 %v1290_v54, %v151_v50  ;;  %1614 = vperm.xlu1 %2610, %v504_v51   ;;  %1609 = vperm.xlu0 %2609, %v503_v52   ;;  %v168_v49 = vld [vmem:[%s5508_s1 + $0x4e8] sm:$0xff]  ;;  %v167_v50 = vld [vmem:[%s5508_s1 + $0x4e0] sm:$0xff] }
 0x19b   :  { %v520_v51 = vld [vmem:[%s5507_s0 + $0x6e8] sm:$0xff]  ;;  %v519_v52 = vld [vmem:[%s5507_s0 + $0x6e0] sm:$0xff] }
 0x19c   :  { %2457 = vst.msk [vmem:[%s5509_s2 + $0x468] sm:$0xff] %vm2315_vm0, %v2168_v55  ;;  %2456 = vst.msk [vmem:[%s5509_s2 + $0x460] sm:$0xff] %vm2315_vm0, %v2167_v56 }
 0x19d   :  { %v1305_v61 = vpop.permute.xlu1 %1304  ;;  %v1300_v62 = vpop.permute.xlu0 %1299 }
 0x19e   :  { %v2170_v63 = vmul.f32 %v1305_v61, %v154_v57  ;;  %v2169_v0 = vmul.f32 %v1300_v62, %v153_v58  ;;  %1624 = vperm.xlu1 %2610, %v506_v59   ;;  %1619 = vperm.xlu0 %2609, %v505_v60   ;;  %v170_v57 = vld [vmem:[%s5508_s1 + $0x4f8] sm:$0xff]  ;;  %v169_v58 = vld [vmem:[%s5508_s1 + $0x4f0] sm:$0xff] }
 0x19f   :  { %v522_v59 = vld [vmem:[%s5507_s0 + $0x6f8] sm:$0xff]  ;;  %v521_v60 = vld [vmem:[%s5507_s0 + $0x6f0] sm:$0xff] }
 0x1a0   :  { %2459 = vst.msk [vmem:[%s5509_s2 + $0x478] sm:$0xff] %vm2315_vm0, %v2170_v63  ;;  %2458 = vst.msk [vmem:[%s5509_s2 + $0x470] sm:$0xff] %vm2315_vm0, %v2169_v0 }
 0x1a1   :  { %v1315_v5 = vpop.permute.xlu1 %1314  ;;  %v1310_v6 = vpop.permute.xlu0 %1309 }
 0x1a2   :  { %v2172_v7 = vmul.f32 %v1315_v5, %v156_v1  ;;  %v2171_v8 = vmul.f32 %v1310_v6, %v155_v2  ;;  %1634 = vperm.xlu1 %2610, %v508_v3   ;;  %1629 = vperm.xlu0 %2609, %v507_v4   ;;  %v172_v1 = vld [vmem:[%s5508_s1 + $0x508] sm:$0xff]  ;;  %v171_v2 = vld [vmem:[%s5508_s1 + $0x500] sm:$0xff] }
 0x1a3   :  { %v524_v3 = vld [vmem:[%s5507_s0 + $0x708] sm:$0xff]  ;;  %v523_v4 = vld [vmem:[%s5507_s0 + $0x700] sm:$0xff] }
 0x1a4   :  { %2461 = vst.msk [vmem:[%s5509_s2 + $0x488] sm:$0xff] %vm2315_vm0, %v2172_v7  ;;  %2460 = vst.msk [vmem:[%s5509_s2 + $0x480] sm:$0xff] %vm2315_vm0, %v2171_v8 }
 0x1a5   :  { %v1325_v13 = vpop.permute.xlu1 %1324  ;;  %v1320_v14 = vpop.permute.xlu0 %1319 }
 0x1a6   :  { %v2174_v15 = vmul.f32 %v1325_v13, %v158_v9  ;;  %v2173_v16 = vmul.f32 %v1320_v14, %v157_v10  ;;  %1644 = vperm.xlu1 %2610, %v510_v11   ;;  %1639 = vperm.xlu0 %2609, %v509_v12   ;;  %v174_v9 = vld [vmem:[%s5508_s1 + $0x518] sm:$0xff]  ;;  %v173_v10 = vld [vmem:[%s5508_s1 + $0x510] sm:$0xff] }
 0x1a7   :  { %v526_v11 = vld [vmem:[%s5507_s0 + $0x718] sm:$0xff]  ;;  %v525_v12 = vld [vmem:[%s5507_s0 + $0x710] sm:$0xff] }
 0x1a8   :  { %2463 = vst.msk [vmem:[%s5509_s2 + $0x498] sm:$0xff] %vm2315_vm0, %v2174_v15  ;;  %2462 = vst.msk [vmem:[%s5509_s2 + $0x490] sm:$0xff] %vm2315_vm0, %v2173_v16 }
 0x1a9   :  { %v1335_v21 = vpop.permute.xlu1 %1334  ;;  %v1330_v22 = vpop.permute.xlu0 %1329 }
 0x1aa   :  { %v2176_v23 = vmul.f32 %v1335_v21, %v160_v17  ;;  %v2175_v24 = vmul.f32 %v1330_v22, %v159_v18  ;;  %1654 = vperm.xlu1 %2610, %v512_v19   ;;  %1649 = vperm.xlu0 %2609, %v511_v20   ;;  %v176_v17 = vld [vmem:[%s5508_s1 + $0x528] sm:$0xff]  ;;  %v175_v18 = vld [vmem:[%s5508_s1 + $0x520] sm:$0xff] }
 0x1ab   :  { %v528_v19 = vld [vmem:[%s5507_s0 + $0x728] sm:$0xff]  ;;  %v527_v20 = vld [vmem:[%s5507_s0 + $0x720] sm:$0xff] }
 0x1ac   :  { %2465 = vst.msk [vmem:[%s5509_s2 + $0x4a8] sm:$0xff] %vm2315_vm0, %v2176_v23  ;;  %2464 = vst.msk [vmem:[%s5509_s2 + $0x4a0] sm:$0xff] %vm2315_vm0, %v2175_v24 }
 0x1ad   :  { %v1345_v29 = vpop.permute.xlu1 %1344  ;;  %v1340_v30 = vpop.permute.xlu0 %1339 }
 0x1ae   :  { %v2178_v31 = vmul.f32 %v1345_v29, %v162_v25  ;;  %v2177_v32 = vmul.f32 %v1340_v30, %v161_v26  ;;  %1664 = vperm.xlu1 %2610, %v514_v27   ;;  %1659 = vperm.xlu0 %2609, %v513_v28   ;;  %v178_v25 = vld [vmem:[%s5508_s1 + $0x538] sm:$0xff]  ;;  %v177_v26 = vld [vmem:[%s5508_s1 + $0x530] sm:$0xff] }
 0x1af   :  { %v530_v27 = vld [vmem:[%s5507_s0 + $0x738] sm:$0xff]  ;;  %v529_v28 = vld [vmem:[%s5507_s0 + $0x730] sm:$0xff] }
 0x1b0   :  { %2467 = vst.msk [vmem:[%s5509_s2 + $0x4b8] sm:$0xff] %vm2315_vm0, %v2178_v31  ;;  %2466 = vst.msk [vmem:[%s5509_s2 + $0x4b0] sm:$0xff] %vm2315_vm0, %v2177_v32 }
 0x1b1   :  { %v1355_v37 = vpop.permute.xlu1 %1354  ;;  %v1350_v38 = vpop.permute.xlu0 %1349 }
 0x1b2   :  { %v2180_v39 = vmul.f32 %v1355_v37, %v164_v33  ;;  %v2179_v40 = vmul.f32 %v1350_v38, %v163_v34  ;;  %1674 = vperm.xlu1 %2610, %v516_v35   ;;  %1669 = vperm.xlu0 %2609, %v515_v36   ;;  %v180_v33 = vld [vmem:[%s5508_s1 + $0x548] sm:$0xff]  ;;  %v179_v34 = vld [vmem:[%s5508_s1 + $0x540] sm:$0xff] }
 0x1b3   :  { %v532_v35 = vld [vmem:[%s5507_s0 + $0x748] sm:$0xff]  ;;  %v531_v36 = vld [vmem:[%s5507_s0 + $0x740] sm:$0xff] }
 0x1b4   :  { %2469 = vst.msk [vmem:[%s5509_s2 + $0x4c8] sm:$0xff] %vm2315_vm0, %v2180_v39  ;;  %2468 = vst.msk [vmem:[%s5509_s2 + $0x4c0] sm:$0xff] %vm2315_vm0, %v2179_v40 }
 0x1b5   :  { %v1365_v45 = vpop.permute.xlu1 %1364  ;;  %v1360_v46 = vpop.permute.xlu0 %1359 }
 0x1b6   :  { %v2182_v47 = vmul.f32 %v1365_v45, %v166_v41  ;;  %v2181_v48 = vmul.f32 %v1360_v46, %v165_v42  ;;  %1684 = vperm.xlu1 %2610, %v518_v43   ;;  %1679 = vperm.xlu0 %2609, %v517_v44   ;;  %v182_v41 = vld [vmem:[%s5508_s1 + $0x558] sm:$0xff]  ;;  %v181_v42 = vld [vmem:[%s5508_s1 + $0x550] sm:$0xff] }
 0x1b7   :  { %v534_v43 = vld [vmem:[%s5507_s0 + $0x758] sm:$0xff]  ;;  %v533_v44 = vld [vmem:[%s5507_s0 + $0x750] sm:$0xff] }
 0x1b8   :  { %2471 = vst.msk [vmem:[%s5509_s2 + $0x4d8] sm:$0xff] %vm2315_vm0, %v2182_v47  ;;  %2470 = vst.msk [vmem:[%s5509_s2 + $0x4d0] sm:$0xff] %vm2315_vm0, %v2181_v48 }
 0x1b9   :  { %v1375_v53 = vpop.permute.xlu1 %1374  ;;  %v1370_v54 = vpop.permute.xlu0 %1369 }
 0x1ba   :  { %v2184_v55 = vmul.f32 %v1375_v53, %v168_v49  ;;  %v2183_v56 = vmul.f32 %v1370_v54, %v167_v50  ;;  %1694 = vperm.xlu1 %2610, %v520_v51   ;;  %1689 = vperm.xlu0 %2609, %v519_v52   ;;  %v184_v49 = vld [vmem:[%s5508_s1 + $0x568] sm:$0xff]  ;;  %v183_v50 = vld [vmem:[%s5508_s1 + $0x560] sm:$0xff] }
 0x1bb   :  { %v536_v51 = vld [vmem:[%s5507_s0 + $0x768] sm:$0xff]  ;;  %v535_v52 = vld [vmem:[%s5507_s0 + $0x760] sm:$0xff] }
 0x1bc   :  { %2473 = vst.msk [vmem:[%s5509_s2 + $0x4e8] sm:$0xff] %vm2315_vm0, %v2184_v55  ;;  %2472 = vst.msk [vmem:[%s5509_s2 + $0x4e0] sm:$0xff] %vm2315_vm0, %v2183_v56 }
 0x1bd   :  { %v1385_v61 = vpop.permute.xlu1 %1384  ;;  %v1380_v62 = vpop.permute.xlu0 %1379 }
 0x1be   :  { %v2186_v63 = vmul.f32 %v1385_v61, %v170_v57  ;;  %v2185_v0 = vmul.f32 %v1380_v62, %v169_v58  ;;  %1704 = vperm.xlu1 %2610, %v522_v59   ;;  %1699 = vperm.xlu0 %2609, %v521_v60   ;;  %v186_v57 = vld [vmem:[%s5508_s1 + $0x578] sm:$0xff]  ;;  %v185_v58 = vld [vmem:[%s5508_s1 + $0x570] sm:$0xff] }
 0x1bf   :  { %v538_v59 = vld [vmem:[%s5507_s0 + $0x778] sm:$0xff]  ;;  %v537_v60 = vld [vmem:[%s5507_s0 + $0x770] sm:$0xff] }
 0x1c0   :  { %2475 = vst.msk [vmem:[%s5509_s2 + $0x4f8] sm:$0xff] %vm2315_vm0, %v2186_v63  ;;  %2474 = vst.msk [vmem:[%s5509_s2 + $0x4f0] sm:$0xff] %vm2315_vm0, %v2185_v0 }
 0x1c1   :  { %v1395_v5 = vpop.permute.xlu1 %1394  ;;  %v1390_v6 = vpop.permute.xlu0 %1389 }
 0x1c2   :  { %v2188_v7 = vmul.f32 %v1395_v5, %v172_v1  ;;  %v2187_v8 = vmul.f32 %v1390_v6, %v171_v2  ;;  %1714 = vperm.xlu1 %2610, %v524_v3   ;;  %1709 = vperm.xlu0 %2609, %v523_v4   ;;  %v188_v1 = vld [vmem:[%s5508_s1 + $0x588] sm:$0xff]  ;;  %v187_v2 = vld [vmem:[%s5508_s1 + $0x580] sm:$0xff] }
 0x1c3   :  { %v540_v3 = vld [vmem:[%s5507_s0 + $0x788] sm:$0xff]  ;;  %v539_v4 = vld [vmem:[%s5507_s0 + $0x780] sm:$0xff] }
 0x1c4   :  { %2477 = vst.msk [vmem:[%s5509_s2 + $0x508] sm:$0xff] %vm2315_vm0, %v2188_v7  ;;  %2476 = vst.msk [vmem:[%s5509_s2 + $0x500] sm:$0xff] %vm2315_vm0, %v2187_v8 }
 0x1c5   :  { %v1405_v13 = vpop.permute.xlu1 %1404  ;;  %v1400_v14 = vpop.permute.xlu0 %1399 }
 0x1c6   :  { %v2190_v15 = vmul.f32 %v1405_v13, %v174_v9  ;;  %v2189_v16 = vmul.f32 %v1400_v14, %v173_v10  ;;  %1724 = vperm.xlu1 %2610, %v526_v11   ;;  %1719 = vperm.xlu0 %2609, %v525_v12   ;;  %v190_v9 = vld [vmem:[%s5508_s1 + $0x598] sm:$0xff]  ;;  %v189_v10 = vld [vmem:[%s5508_s1 + $0x590] sm:$0xff] }
 0x1c7   :  { %v542_v11 = vld [vmem:[%s5507_s0 + $0x798] sm:$0xff]  ;;  %v541_v12 = vld [vmem:[%s5507_s0 + $0x790] sm:$0xff] }
 0x1c8   :  { %2479 = vst.msk [vmem:[%s5509_s2 + $0x518] sm:$0xff] %vm2315_vm0, %v2190_v15  ;;  %2478 = vst.msk [vmem:[%s5509_s2 + $0x510] sm:$0xff] %vm2315_vm0, %v2189_v16 }
 0x1c9   :  { %v1415_v21 = vpop.permute.xlu1 %1414  ;;  %v1410_v22 = vpop.permute.xlu0 %1409 }
 0x1ca   :  { %v2192_v23 = vmul.f32 %v1415_v21, %v176_v17  ;;  %v2191_v24 = vmul.f32 %v1410_v22, %v175_v18  ;;  %1734 = vperm.xlu1 %2610, %v528_v19   ;;  %1729 = vperm.xlu0 %2609, %v527_v20   ;;  %v192_v17 = vld [vmem:[%s5508_s1 + $0x5a8] sm:$0xff]  ;;  %v191_v18 = vld [vmem:[%s5508_s1 + $0x5a0] sm:$0xff] }
 0x1cb   :  { %v544_v19 = vld [vmem:[%s5507_s0 + $0x7a8] sm:$0xff]  ;;  %v543_v20 = vld [vmem:[%s5507_s0 + $0x7a0] sm:$0xff] }
 0x1cc   :  { %2481 = vst.msk [vmem:[%s5509_s2 + $0x528] sm:$0xff] %vm2315_vm0, %v2192_v23  ;;  %2480 = vst.msk [vmem:[%s5509_s2 + $0x520] sm:$0xff] %vm2315_vm0, %v2191_v24 }
 0x1cd   :  { %v1425_v29 = vpop.permute.xlu1 %1424  ;;  %v1420_v30 = vpop.permute.xlu0 %1419 }
 0x1ce   :  { %v2194_v31 = vmul.f32 %v1425_v29, %v178_v25  ;;  %v2193_v32 = vmul.f32 %v1420_v30, %v177_v26  ;;  %1744 = vperm.xlu1 %2610, %v530_v27   ;;  %1739 = vperm.xlu0 %2609, %v529_v28   ;;  %v194_v25 = vld [vmem:[%s5508_s1 + $0x5b8] sm:$0xff]  ;;  %v193_v26 = vld [vmem:[%s5508_s1 + $0x5b0] sm:$0xff] }
 0x1cf   :  { %v546_v27 = vld [vmem:[%s5507_s0 + $0x7b8] sm:$0xff]  ;;  %v545_v28 = vld [vmem:[%s5507_s0 + $0x7b0] sm:$0xff] }
 0x1d0   :  { %2483 = vst.msk [vmem:[%s5509_s2 + $0x538] sm:$0xff] %vm2315_vm0, %v2194_v31  ;;  %2482 = vst.msk [vmem:[%s5509_s2 + $0x530] sm:$0xff] %vm2315_vm0, %v2193_v32 }
 0x1d1   :  { %v1435_v37 = vpop.permute.xlu1 %1434  ;;  %v1430_v38 = vpop.permute.xlu0 %1429 }
 0x1d2   :  { %v2196_v39 = vmul.f32 %v1435_v37, %v180_v33  ;;  %v2195_v40 = vmul.f32 %v1430_v38, %v179_v34  ;;  %1754 = vperm.xlu1 %2610, %v532_v35   ;;  %1749 = vperm.xlu0 %2609, %v531_v36   ;;  %v196_v33 = vld [vmem:[%s5508_s1 + $0x5c8] sm:$0xff]  ;;  %v195_v34 = vld [vmem:[%s5508_s1 + $0x5c0] sm:$0xff] }
 0x1d3   :  { %v548_v35 = vld [vmem:[%s5507_s0 + $0x7c8] sm:$0xff]  ;;  %v547_v36 = vld [vmem:[%s5507_s0 + $0x7c0] sm:$0xff] }
 0x1d4   :  { %2485 = vst.msk [vmem:[%s5509_s2 + $0x548] sm:$0xff] %vm2315_vm0, %v2196_v39  ;;  %2484 = vst.msk [vmem:[%s5509_s2 + $0x540] sm:$0xff] %vm2315_vm0, %v2195_v40 }
 0x1d5   :  { %v1445_v45 = vpop.permute.xlu1 %1444  ;;  %v1440_v46 = vpop.permute.xlu0 %1439 }
 0x1d6   :  { %v2198_v47 = vmul.f32 %v1445_v45, %v182_v41  ;;  %v2197_v48 = vmul.f32 %v1440_v46, %v181_v42  ;;  %1764 = vperm.xlu1 %2610, %v534_v43   ;;  %1759 = vperm.xlu0 %2609, %v533_v44   ;;  %v198_v41 = vld [vmem:[%s5508_s1 + $0x5d8] sm:$0xff]  ;;  %v197_v42 = vld [vmem:[%s5508_s1 + $0x5d0] sm:$0xff] }
 0x1d7   :  { %v550_v43 = vld [vmem:[%s5507_s0 + $0x7d8] sm:$0xff]  ;;  %v549_v44 = vld [vmem:[%s5507_s0 + $0x7d0] sm:$0xff] }
 0x1d8   :  { %2487 = vst.msk [vmem:[%s5509_s2 + $0x558] sm:$0xff] %vm2315_vm0, %v2198_v47  ;;  %2486 = vst.msk [vmem:[%s5509_s2 + $0x550] sm:$0xff] %vm2315_vm0, %v2197_v48 }
 0x1d9   :  { %v1455_v53 = vpop.permute.xlu1 %1454  ;;  %v1450_v54 = vpop.permute.xlu0 %1449 }
 0x1da   :  { %v2200_v55 = vmul.f32 %v1455_v53, %v184_v49  ;;  %v2199_v56 = vmul.f32 %v1450_v54, %v183_v50  ;;  %1774 = vperm.xlu1 %2610, %v536_v51   ;;  %1769 = vperm.xlu0 %2609, %v535_v52   ;;  %v200_v49 = vld [vmem:[%s5508_s1 + $0x5e8] sm:$0xff]  ;;  %v199_v50 = vld [vmem:[%s5508_s1 + $0x5e0] sm:$0xff] }
 0x1db   :  { %v552_v51 = vld [vmem:[%s5507_s0 + $0x7e8] sm:$0xff]  ;;  %v551_v52 = vld [vmem:[%s5507_s0 + $0x7e0] sm:$0xff] }
 0x1dc   :  { %2489 = vst.msk [vmem:[%s5509_s2 + $0x568] sm:$0xff] %vm2315_vm0, %v2200_v55  ;;  %2488 = vst.msk [vmem:[%s5509_s2 + $0x560] sm:$0xff] %vm2315_vm0, %v2199_v56 }
 0x1dd   :  { %v1465_v61 = vpop.permute.xlu1 %1464  ;;  %v1460_v62 = vpop.permute.xlu0 %1459 }
 0x1de   :  { %v2202_v63 = vmul.f32 %v1465_v61, %v186_v57  ;;  %v2201_v0 = vmul.f32 %v1460_v62, %v185_v58  ;;  %1784 = vperm.xlu1 %2610, %v538_v59   ;;  %1779 = vperm.xlu0 %2609, %v537_v60   ;;  %v202_v57 = vld [vmem:[%s5508_s1 + $0x5f8] sm:$0xff]  ;;  %v201_v58 = vld [vmem:[%s5508_s1 + $0x5f0] sm:$0xff] }
 0x1df   :  { %v554_v59 = vld [vmem:[%s5507_s0 + $0x7f8] sm:$0xff]  ;;  %v553_v60 = vld [vmem:[%s5507_s0 + $0x7f0] sm:$0xff] }
 0x1e0   :  { %2491 = vst.msk [vmem:[%s5509_s2 + $0x578] sm:$0xff] %vm2315_vm0, %v2202_v63  ;;  %2490 = vst.msk [vmem:[%s5509_s2 + $0x570] sm:$0xff] %vm2315_vm0, %v2201_v0 }
 0x1e1   :  { %v1475_v5 = vpop.permute.xlu1 %1474  ;;  %v1470_v6 = vpop.permute.xlu0 %1469 }
 0x1e2   :  { %v2204_v7 = vmul.f32 %v1475_v5, %v188_v1  ;;  %v2203_v8 = vmul.f32 %v1470_v6, %v187_v2  ;;  %1794 = vperm.xlu1 %2610, %v540_v3   ;;  %1789 = vperm.xlu0 %2609, %v539_v4   ;;  %v204_v1 = vld [vmem:[%s5508_s1 + $0x608] sm:$0xff]  ;;  %v203_v2 = vld [vmem:[%s5508_s1 + $0x600] sm:$0xff] }
 0x1e3   :  { %v556_v3 = vld [vmem:[%s5507_s0 + $0x808] sm:$0xff]  ;;  %v555_v4 = vld [vmem:[%s5507_s0 + $0x800] sm:$0xff] }
 0x1e4   :  { %2493 = vst.msk [vmem:[%s5509_s2 + $0x588] sm:$0xff] %vm2315_vm0, %v2204_v7  ;;  %2492 = vst.msk [vmem:[%s5509_s2 + $0x580] sm:$0xff] %vm2315_vm0, %v2203_v8 }
 0x1e5   :  { %v1485_v13 = vpop.permute.xlu1 %1484  ;;  %v1480_v14 = vpop.permute.xlu0 %1479 }
 0x1e6   :  { %v2206_v15 = vmul.f32 %v1485_v13, %v190_v9  ;;  %v2205_v16 = vmul.f32 %v1480_v14, %v189_v10  ;;  %1804 = vperm.xlu1 %2610, %v542_v11   ;;  %1799 = vperm.xlu0 %2609, %v541_v12   ;;  %v206_v9 = vld [vmem:[%s5508_s1 + $0x618] sm:$0xff]  ;;  %v205_v10 = vld [vmem:[%s5508_s1 + $0x610] sm:$0xff] }
 0x1e7   :  { %v558_v11 = vld [vmem:[%s5507_s0 + $0x818] sm:$0xff]  ;;  %v557_v12 = vld [vmem:[%s5507_s0 + $0x810] sm:$0xff] }
 0x1e8   :  { %2495 = vst.msk [vmem:[%s5509_s2 + $0x598] sm:$0xff] %vm2315_vm0, %v2206_v15  ;;  %2494 = vst.msk [vmem:[%s5509_s2 + $0x590] sm:$0xff] %vm2315_vm0, %v2205_v16 }
 0x1e9   :  { %v1495_v21 = vpop.permute.xlu1 %1494  ;;  %v1490_v22 = vpop.permute.xlu0 %1489 }
 0x1ea   :  { %v2208_v23 = vmul.f32 %v1495_v21, %v192_v17  ;;  %v2207_v24 = vmul.f32 %v1490_v22, %v191_v18  ;;  %1814 = vperm.xlu1 %2610, %v544_v19   ;;  %1809 = vperm.xlu0 %2609, %v543_v20   ;;  %v208_v17 = vld [vmem:[%s5508_s1 + $0x628] sm:$0xff]  ;;  %v207_v18 = vld [vmem:[%s5508_s1 + $0x620] sm:$0xff] }
 0x1eb   :  { %v560_v19 = vld [vmem:[%s5507_s0 + $0x828] sm:$0xff]  ;;  %v559_v20 = vld [vmem:[%s5507_s0 + $0x820] sm:$0xff] }
 0x1ec   :  { %2497 = vst.msk [vmem:[%s5509_s2 + $0x5a8] sm:$0xff] %vm2315_vm0, %v2208_v23  ;;  %2496 = vst.msk [vmem:[%s5509_s2 + $0x5a0] sm:$0xff] %vm2315_vm0, %v2207_v24 }
 0x1ed   :  { %v1505_v29 = vpop.permute.xlu1 %1504  ;;  %v1500_v30 = vpop.permute.xlu0 %1499 }
 0x1ee   :  { %v2210_v31 = vmul.f32 %v1505_v29, %v194_v25  ;;  %v2209_v32 = vmul.f32 %v1500_v30, %v193_v26  ;;  %1824 = vperm.xlu1 %2610, %v546_v27   ;;  %1819 = vperm.xlu0 %2609, %v545_v28   ;;  %v210_v25 = vld [vmem:[%s5508_s1 + $0x638] sm:$0xff]  ;;  %v209_v26 = vld [vmem:[%s5508_s1 + $0x630] sm:$0xff] }
 0x1ef   :  { %v562_v27 = vld [vmem:[%s5507_s0 + $0x838] sm:$0xff]  ;;  %v561_v28 = vld [vmem:[%s5507_s0 + $0x830] sm:$0xff] }
 0x1f0   :  { %2499 = vst.msk [vmem:[%s5509_s2 + $0x5b8] sm:$0xff] %vm2315_vm0, %v2210_v31  ;;  %2498 = vst.msk [vmem:[%s5509_s2 + $0x5b0] sm:$0xff] %vm2315_vm0, %v2209_v32 }
 0x1f1   :  { %v1515_v37 = vpop.permute.xlu1 %1514  ;;  %v1510_v38 = vpop.permute.xlu0 %1509 }
 0x1f2   :  { %v2212_v39 = vmul.f32 %v1515_v37, %v196_v33  ;;  %v2211_v40 = vmul.f32 %v1510_v38, %v195_v34  ;;  %1834 = vperm.xlu1 %2610, %v548_v35   ;;  %1829 = vperm.xlu0 %2609, %v547_v36   ;;  %v212_v33 = vld [vmem:[%s5508_s1 + $0x648] sm:$0xff]  ;;  %v211_v34 = vld [vmem:[%s5508_s1 + $0x640] sm:$0xff] }
 0x1f3   :  { %v564_v35 = vld [vmem:[%s5507_s0 + $0x848] sm:$0xff]  ;;  %v563_v36 = vld [vmem:[%s5507_s0 + $0x840] sm:$0xff] }
 0x1f4   :  { %2501 = vst.msk [vmem:[%s5509_s2 + $0x5c8] sm:$0xff] %vm2315_vm0, %v2212_v39  ;;  %2500 = vst.msk [vmem:[%s5509_s2 + $0x5c0] sm:$0xff] %vm2315_vm0, %v2211_v40 }
 0x1f5   :  { %v1525_v45 = vpop.permute.xlu1 %1524  ;;  %v1520_v46 = vpop.permute.xlu0 %1519 }
 0x1f6   :  { %v2214_v47 = vmul.f32 %v1525_v45, %v198_v41  ;;  %v2213_v48 = vmul.f32 %v1520_v46, %v197_v42  ;;  %1844 = vperm.xlu1 %2610, %v550_v43   ;;  %1839 = vperm.xlu0 %2609, %v549_v44   ;;  %v214_v41 = vld [vmem:[%s5508_s1 + $0x658] sm:$0xff]  ;;  %v213_v42 = vld [vmem:[%s5508_s1 + $0x650] sm:$0xff] }
 0x1f7   :  { %v566_v43 = vld [vmem:[%s5507_s0 + $0x858] sm:$0xff]  ;;  %v565_v44 = vld [vmem:[%s5507_s0 + $0x850] sm:$0xff] }
 0x1f8   :  { %2503 = vst.msk [vmem:[%s5509_s2 + $0x5d8] sm:$0xff] %vm2315_vm0, %v2214_v47  ;;  %2502 = vst.msk [vmem:[%s5509_s2 + $0x5d0] sm:$0xff] %vm2315_vm0, %v2213_v48 }
 0x1f9   :  { %v1535_v53 = vpop.permute.xlu1 %1534  ;;  %v1530_v54 = vpop.permute.xlu0 %1529 }
 0x1fa   :  { %v2216_v55 = vmul.f32 %v1535_v53, %v200_v49  ;;  %v2215_v56 = vmul.f32 %v1530_v54, %v199_v50  ;;  %1854 = vperm.xlu1 %2610, %v552_v51   ;;  %1849 = vperm.xlu0 %2609, %v551_v52   ;;  %v216_v49 = vld [vmem:[%s5508_s1 + $0x668] sm:$0xff]  ;;  %v215_v50 = vld [vmem:[%s5508_s1 + $0x660] sm:$0xff] }
 0x1fb   :  { %v568_v51 = vld [vmem:[%s5507_s0 + $0x868] sm:$0xff]  ;;  %v567_v52 = vld [vmem:[%s5507_s0 + $0x860] sm:$0xff] }
 0x1fc   :  { %2505 = vst.msk [vmem:[%s5509_s2 + $0x5e8] sm:$0xff] %vm2315_vm0, %v2216_v55  ;;  %2504 = vst.msk [vmem:[%s5509_s2 + $0x5e0] sm:$0xff] %vm2315_vm0, %v2215_v56 }
 0x1fd   :  { %v1545_v61 = vpop.permute.xlu1 %1544  ;;  %v1540_v62 = vpop.permute.xlu0 %1539 }
 0x1fe   :  { %v2218_v63 = vmul.f32 %v1545_v61, %v202_v57  ;;  %v2217_v0 = vmul.f32 %v1540_v62, %v201_v58  ;;  %1864 = vperm.xlu1 %2610, %v554_v59   ;;  %1859 = vperm.xlu0 %2609, %v553_v60   ;;  %v218_v57 = vld [vmem:[%s5508_s1 + $0x678] sm:$0xff]  ;;  %v217_v58 = vld [vmem:[%s5508_s1 + $0x670] sm:$0xff] }
 0x1ff   :  { %v570_v59 = vld [vmem:[%s5507_s0 + $0x878] sm:$0xff]  ;;  %v569_v60 = vld [vmem:[%s5507_s0 + $0x870] sm:$0xff] }
 0x200   :  { %2507 = vst.msk [vmem:[%s5509_s2 + $0x5f8] sm:$0xff] %vm2315_vm0, %v2218_v63  ;;  %2506 = vst.msk [vmem:[%s5509_s2 + $0x5f0] sm:$0xff] %vm2315_vm0, %v2217_v0 }
 0x201   :  { %v1555_v5 = vpop.permute.xlu1 %1554  ;;  %v1550_v6 = vpop.permute.xlu0 %1549 }
 0x202   :  { %v2220_v7 = vmul.f32 %v1555_v5, %v204_v1  ;;  %v2219_v8 = vmul.f32 %v1550_v6, %v203_v2  ;;  %1874 = vperm.xlu1 %2610, %v556_v3   ;;  %1869 = vperm.xlu0 %2609, %v555_v4   ;;  %v220_v1 = vld [vmem:[%s5508_s1 + $0x688] sm:$0xff]  ;;  %v219_v2 = vld [vmem:[%s5508_s1 + $0x680] sm:$0xff] }
 0x203   :  { %v572_v3 = vld [vmem:[%s5507_s0 + $0x888] sm:$0xff]  ;;  %v571_v4 = vld [vmem:[%s5507_s0 + $0x880] sm:$0xff] }
 0x204   :  { %2509 = vst.msk [vmem:[%s5509_s2 + $0x608] sm:$0xff] %vm2315_vm0, %v2220_v7  ;;  %2508 = vst.msk [vmem:[%s5509_s2 + $0x600] sm:$0xff] %vm2315_vm0, %v2219_v8 }
 0x205   :  { %v1565_v13 = vpop.permute.xlu1 %1564  ;;  %v1560_v14 = vpop.permute.xlu0 %1559 }
 0x206   :  { %v2222_v15 = vmul.f32 %v1565_v13, %v206_v9  ;;  %v2221_v16 = vmul.f32 %v1560_v14, %v205_v10  ;;  %1884 = vperm.xlu1 %2610, %v558_v11   ;;  %1879 = vperm.xlu0 %2609, %v557_v12   ;;  %v222_v9 = vld [vmem:[%s5508_s1 + $0x698] sm:$0xff]  ;;  %v221_v10 = vld [vmem:[%s5508_s1 + $0x690] sm:$0xff] }
 0x207   :  { %v574_v11 = vld [vmem:[%s5507_s0 + $0x898] sm:$0xff]  ;;  %v573_v12 = vld [vmem:[%s5507_s0 + $0x890] sm:$0xff] }
 0x208   :  { %2511 = vst.msk [vmem:[%s5509_s2 + $0x618] sm:$0xff] %vm2315_vm0, %v2222_v15  ;;  %2510 = vst.msk [vmem:[%s5509_s2 + $0x610] sm:$0xff] %vm2315_vm0, %v2221_v16 }
 0x209   :  { %v1575_v21 = vpop.permute.xlu1 %1574  ;;  %v1570_v22 = vpop.permute.xlu0 %1569 }
 0x20a   :  { %v2224_v23 = vmul.f32 %v1575_v21, %v208_v17  ;;  %v2223_v24 = vmul.f32 %v1570_v22, %v207_v18  ;;  %1894 = vperm.xlu1 %2610, %v560_v19   ;;  %1889 = vperm.xlu0 %2609, %v559_v20   ;;  %v224_v17 = vld [vmem:[%s5508_s1 + $0x6a8] sm:$0xff]  ;;  %v223_v18 = vld [vmem:[%s5508_s1 + $0x6a0] sm:$0xff] }
 0x20b   :  { %v576_v19 = vld [vmem:[%s5507_s0 + $0x8a8] sm:$0xff]  ;;  %v575_v20 = vld [vmem:[%s5507_s0 + $0x8a0] sm:$0xff] }
 0x20c   :  { %2513 = vst.msk [vmem:[%s5509_s2 + $0x628] sm:$0xff] %vm2315_vm0, %v2224_v23  ;;  %2512 = vst.msk [vmem:[%s5509_s2 + $0x620] sm:$0xff] %vm2315_vm0, %v2223_v24 }
 0x20d   :  { %v1585_v29 = vpop.permute.xlu1 %1584  ;;  %v1580_v30 = vpop.permute.xlu0 %1579 }
 0x20e   :  { %v2226_v31 = vmul.f32 %v1585_v29, %v210_v25  ;;  %v2225_v32 = vmul.f32 %v1580_v30, %v209_v26  ;;  %1904 = vperm.xlu1 %2610, %v562_v27   ;;  %1899 = vperm.xlu0 %2609, %v561_v28   ;;  %v226_v25 = vld [vmem:[%s5508_s1 + $0x6b8] sm:$0xff]  ;;  %v225_v26 = vld [vmem:[%s5508_s1 + $0x6b0] sm:$0xff] }
 0x20f   :  { %v578_v27 = vld [vmem:[%s5507_s0 + $0x8b8] sm:$0xff]  ;;  %v577_v28 = vld [vmem:[%s5507_s0 + $0x8b0] sm:$0xff] }
 0x210   :  { %2515 = vst.msk [vmem:[%s5509_s2 + $0x638] sm:$0xff] %vm2315_vm0, %v2226_v31  ;;  %2514 = vst.msk [vmem:[%s5509_s2 + $0x630] sm:$0xff] %vm2315_vm0, %v2225_v32 }
 0x211   :  { %v1595_v37 = vpop.permute.xlu1 %1594  ;;  %v1590_v38 = vpop.permute.xlu0 %1589 }
 0x212   :  { %v2228_v39 = vmul.f32 %v1595_v37, %v212_v33  ;;  %v2227_v40 = vmul.f32 %v1590_v38, %v211_v34  ;;  %1914 = vperm.xlu1 %2610, %v564_v35   ;;  %1909 = vperm.xlu0 %2609, %v563_v36   ;;  %v228_v33 = vld [vmem:[%s5508_s1 + $0x6c8] sm:$0xff]  ;;  %v227_v34 = vld [vmem:[%s5508_s1 + $0x6c0] sm:$0xff] }
 0x213   :  { %v580_v35 = vld [vmem:[%s5507_s0 + $0x8c8] sm:$0xff]  ;;  %v579_v36 = vld [vmem:[%s5507_s0 + $0x8c0] sm:$0xff] }
 0x214   :  { %2517 = vst.msk [vmem:[%s5509_s2 + $0x648] sm:$0xff] %vm2315_vm0, %v2228_v39  ;;  %2516 = vst.msk [vmem:[%s5509_s2 + $0x640] sm:$0xff] %vm2315_vm0, %v2227_v40 }
 0x215   :  { %v1605_v45 = vpop.permute.xlu1 %1604  ;;  %v1600_v46 = vpop.permute.xlu0 %1599 }
 0x216   :  { %v2230_v47 = vmul.f32 %v1605_v45, %v214_v41  ;;  %v2229_v48 = vmul.f32 %v1600_v46, %v213_v42  ;;  %1924 = vperm.xlu1 %2610, %v566_v43   ;;  %1919 = vperm.xlu0 %2609, %v565_v44   ;;  %v230_v41 = vld [vmem:[%s5508_s1 + $0x6d8] sm:$0xff]  ;;  %v229_v42 = vld [vmem:[%s5508_s1 + $0x6d0] sm:$0xff] }
 0x217   :  { %v582_v43 = vld [vmem:[%s5507_s0 + $0x8d8] sm:$0xff]  ;;  %v581_v44 = vld [vmem:[%s5507_s0 + $0x8d0] sm:$0xff] }
 0x218   :  { %2519 = vst.msk [vmem:[%s5509_s2 + $0x658] sm:$0xff] %vm2315_vm0, %v2230_v47  ;;  %2518 = vst.msk [vmem:[%s5509_s2 + $0x650] sm:$0xff] %vm2315_vm0, %v2229_v48 }
 0x219   :  { %v1615_v53 = vpop.permute.xlu1 %1614  ;;  %v1610_v54 = vpop.permute.xlu0 %1609 }
 0x21a   :  { %v2232_v55 = vmul.f32 %v1615_v53, %v216_v49  ;;  %v2231_v56 = vmul.f32 %v1610_v54, %v215_v50  ;;  %1934 = vperm.xlu1 %2610, %v568_v51   ;;  %1929 = vperm.xlu0 %2609, %v567_v52   ;;  %v232_v49 = vld [vmem:[%s5508_s1 + $0x6e8] sm:$0xff]  ;;  %v231_v50 = vld [vmem:[%s5508_s1 + $0x6e0] sm:$0xff] }
 0x21b   :  { %v584_v51 = vld [vmem:[%s5507_s0 + $0x8e8] sm:$0xff]  ;;  %v583_v52 = vld [vmem:[%s5507_s0 + $0x8e0] sm:$0xff] }
 0x21c   :  { %2521 = vst.msk [vmem:[%s5509_s2 + $0x668] sm:$0xff] %vm2315_vm0, %v2232_v55  ;;  %2520 = vst.msk [vmem:[%s5509_s2 + $0x660] sm:$0xff] %vm2315_vm0, %v2231_v56 }
 0x21d   :  { %v1625_v61 = vpop.permute.xlu1 %1624  ;;  %v1620_v62 = vpop.permute.xlu0 %1619 }
 0x21e   :  { %v2234_v63 = vmul.f32 %v1625_v61, %v218_v57  ;;  %v2233_v0 = vmul.f32 %v1620_v62, %v217_v58  ;;  %1944 = vperm.xlu1 %2610, %v570_v59   ;;  %1939 = vperm.xlu0 %2609, %v569_v60   ;;  %v234_v57 = vld [vmem:[%s5508_s1 + $0x6f8] sm:$0xff]  ;;  %v233_v58 = vld [vmem:[%s5508_s1 + $0x6f0] sm:$0xff] }
 0x21f   :  { %v586_v59 = vld [vmem:[%s5507_s0 + $0x8f8] sm:$0xff]  ;;  %v585_v60 = vld [vmem:[%s5507_s0 + $0x8f0] sm:$0xff] }
 0x220   :  { %2523 = vst.msk [vmem:[%s5509_s2 + $0x678] sm:$0xff] %vm2315_vm0, %v2234_v63  ;;  %2522 = vst.msk [vmem:[%s5509_s2 + $0x670] sm:$0xff] %vm2315_vm0, %v2233_v0 }
 0x221   :  { %v1635_v5 = vpop.permute.xlu1 %1634  ;;  %v1630_v6 = vpop.permute.xlu0 %1629 }
 0x222   :  { %v2236_v7 = vmul.f32 %v1635_v5, %v220_v1  ;;  %v2235_v8 = vmul.f32 %v1630_v6, %v219_v2  ;;  %1954 = vperm.xlu1 %2610, %v572_v3   ;;  %1949 = vperm.xlu0 %2609, %v571_v4   ;;  %v236_v1 = vld [vmem:[%s5508_s1 + $0x708] sm:$0xff]  ;;  %v235_v2 = vld [vmem:[%s5508_s1 + $0x700] sm:$0xff] }
 0x224   :  { %2525 = vst.msk [vmem:[%s5509_s2 + $0x688] sm:$0xff] %vm2315_vm0, %v2236_v7  ;;  %2524 = vst.msk [vmem:[%s5509_s2 + $0x680] sm:$0xff] %vm2315_vm0, %v2235_v8  ;;  %v238_v7 = vld [vmem:[%s5508_s1 + $0x718] sm:$0xff]  ;;  %v237_v8 = vld [vmem:[%s5508_s1 + $0x710] sm:$0xff] }
 0x225   :  { %v1645_v13 = vpop.permute.xlu1 %1644  ;;  %v1640_v14 = vpop.permute.xlu0 %1639 }
 0x226   :  { %v2238_v15 = vmul.f32 %v1645_v13, %v222_v9  ;;  %v2237_v16 = vmul.f32 %v1640_v14, %v221_v10  ;;  %1964 = vperm.xlu1 %2610, %v574_v11   ;;  %1959 = vperm.xlu0 %2609, %v573_v12   ;;  %v240_v13 = vld [vmem:[%s5508_s1 + $0x728] sm:$0xff]  ;;  %v239_v14 = vld [vmem:[%s5508_s1 + $0x720] sm:$0xff] }
 0x228   :  { %2527 = vst.msk [vmem:[%s5509_s2 + $0x698] sm:$0xff] %vm2315_vm0, %v2238_v15  ;;  %2526 = vst.msk [vmem:[%s5509_s2 + $0x690] sm:$0xff] %vm2315_vm0, %v2237_v16 }
 0x229   :  { %v1655_v21 = vpop.permute.xlu1 %1654  ;;  %v1650_v22 = vpop.permute.xlu0 %1649 }
 0x22a   :  { %v2240_v23 = vmul.f32 %v1655_v21, %v224_v17  ;;  %v2239_v24 = vmul.f32 %v1650_v22, %v223_v18  ;;  %1974 = vperm.xlu1 %2610, %v576_v19   ;;  %1969 = vperm.xlu0 %2609, %v575_v20   ;;  %v242_v19 = vld [vmem:[%s5508_s1 + $0x738] sm:$0xff]  ;;  %v241_v20 = vld [vmem:[%s5508_s1 + $0x730] sm:$0xff] }
 0x22c   :  { %2529 = vst.msk [vmem:[%s5509_s2 + $0x6a8] sm:$0xff] %vm2315_vm0, %v2240_v23  ;;  %2528 = vst.msk [vmem:[%s5509_s2 + $0x6a0] sm:$0xff] %vm2315_vm0, %v2239_v24 }
 0x22d   :  { %v1665_v29 = vpop.permute.xlu1 %1664  ;;  %v1660_v30 = vpop.permute.xlu0 %1659 }
 0x22e   :  { %v2242_v31 = vmul.f32 %v1665_v29, %v226_v25  ;;  %v2241_v32 = vmul.f32 %v1660_v30, %v225_v26  ;;  %1984 = vperm.xlu1 %2610, %v578_v27   ;;  %1979 = vperm.xlu0 %2609, %v577_v28   ;;  %v244_v25 = vld [vmem:[%s5508_s1 + $0x748] sm:$0xff]  ;;  %v243_v26 = vld [vmem:[%s5508_s1 + $0x740] sm:$0xff] }
 0x230   :  { %2531 = vst.msk [vmem:[%s5509_s2 + $0x6b8] sm:$0xff] %vm2315_vm0, %v2242_v31  ;;  %2530 = vst.msk [vmem:[%s5509_s2 + $0x6b0] sm:$0xff] %vm2315_vm0, %v2241_v32  ;;  %v246_v31 = vld [vmem:[%s5508_s1 + $0x758] sm:$0xff]  ;;  %v245_v32 = vld [vmem:[%s5508_s1 + $0x750] sm:$0xff] }
 0x231   :  { %v1675_v37 = vpop.permute.xlu1 %1674  ;;  %v1670_v38 = vpop.permute.xlu0 %1669 }
 0x232   :  { %v2244_v39 = vmul.f32 %v1675_v37, %v228_v33  ;;  %v2243_v40 = vmul.f32 %v1670_v38, %v227_v34  ;;  %1994 = vperm.xlu1 %2610, %v580_v35   ;;  %1989 = vperm.xlu0 %2609, %v579_v36   ;;  %v248_v37 = vld [vmem:[%s5508_s1 + $0x768] sm:$0xff]  ;;  %v247_v38 = vld [vmem:[%s5508_s1 + $0x760] sm:$0xff] }
 0x234   :  { %2533 = vst.msk [vmem:[%s5509_s2 + $0x6c8] sm:$0xff] %vm2315_vm0, %v2244_v39  ;;  %2532 = vst.msk [vmem:[%s5509_s2 + $0x6c0] sm:$0xff] %vm2315_vm0, %v2243_v40 }
 0x235   :  { %v1685_v45 = vpop.permute.xlu1 %1684  ;;  %v1680_v46 = vpop.permute.xlu0 %1679 }
 0x236   :  { %v2246_v47 = vmul.f32 %v1685_v45, %v230_v41  ;;  %v2245_v48 = vmul.f32 %v1680_v46, %v229_v42  ;;  %2004 = vperm.xlu1 %2610, %v582_v43   ;;  %1999 = vperm.xlu0 %2609, %v581_v44   ;;  %v250_v43 = vld [vmem:[%s5508_s1 + $0x778] sm:$0xff]  ;;  %v249_v44 = vld [vmem:[%s5508_s1 + $0x770] sm:$0xff] }
 0x238   :  { %2535 = vst.msk [vmem:[%s5509_s2 + $0x6d8] sm:$0xff] %vm2315_vm0, %v2246_v47  ;;  %2534 = vst.msk [vmem:[%s5509_s2 + $0x6d0] sm:$0xff] %vm2315_vm0, %v2245_v48 }
 0x239   :  { %v1695_v53 = vpop.permute.xlu1 %1694  ;;  %v1690_v54 = vpop.permute.xlu0 %1689 }
 0x23a   :  { %v2248_v55 = vmul.f32 %v1695_v53, %v232_v49  ;;  %v2247_v56 = vmul.f32 %v1690_v54, %v231_v50  ;;  %2014 = vperm.xlu1 %2610, %v584_v51   ;;  %2009 = vperm.xlu0 %2609, %v583_v52   ;;  %v252_v49 = vld [vmem:[%s5508_s1 + $0x788] sm:$0xff]  ;;  %v251_v50 = vld [vmem:[%s5508_s1 + $0x780] sm:$0xff] }
 0x23c   :  { %2537 = vst.msk [vmem:[%s5509_s2 + $0x6e8] sm:$0xff] %vm2315_vm0, %v2248_v55  ;;  %2536 = vst.msk [vmem:[%s5509_s2 + $0x6e0] sm:$0xff] %vm2315_vm0, %v2247_v56  ;;  %v254_v55 = vld [vmem:[%s5508_s1 + $0x798] sm:$0xff]  ;;  %v253_v56 = vld [vmem:[%s5508_s1 + $0x790] sm:$0xff] }
 0x23d   :  { %v1705_v61 = vpop.permute.xlu1 %1704  ;;  %v1700_v62 = vpop.permute.xlu0 %1699 }
 0x23e   :  { %v2250_v63 = vmul.f32 %v1705_v61, %v234_v57  ;;  %v2249_v0 = vmul.f32 %v1700_v62, %v233_v58  ;;  %2024 = vperm.xlu1 %2610, %v586_v59   ;;  %2019 = vperm.xlu0 %2609, %v585_v60   ;;  %v256_v61 = vld [vmem:[%s5508_s1 + $0x7a8] sm:$0xff]  ;;  %v255_v62 = vld [vmem:[%s5508_s1 + $0x7a0] sm:$0xff] }
 0x240   :  { %2539 = vst.msk [vmem:[%s5509_s2 + $0x6f8] sm:$0xff] %vm2315_vm0, %v2250_v63  ;;  %2538 = vst.msk [vmem:[%s5509_s2 + $0x6f0] sm:$0xff] %vm2315_vm0, %v2249_v0 }
 0x241   :  { %v1715_v3 = vpop.permute.xlu1 %1714  ;;  %v1710_v4 = vpop.permute.xlu0 %1709 }
 0x242   :  { %v2252_v5 = vmul.f32 %v1715_v3, %v236_v1  ;;  %v2251_v6 = vmul.f32 %v1710_v4, %v235_v2  ;;  %v258_v3 = vld [vmem:[%s5508_s1 + $0x7b8] sm:$0xff]  ;;  %v257_v4 = vld [vmem:[%s5508_s1 + $0x7b0] sm:$0xff] }
 0x244   :  { %2541 = vst.msk [vmem:[%s5509_s2 + $0x708] sm:$0xff] %vm2315_vm0, %v2252_v5  ;;  %2540 = vst.msk [vmem:[%s5509_s2 + $0x700] sm:$0xff] %vm2315_vm0, %v2251_v6 }
 0x245   :  { %v1725_v9 = vpop.permute.xlu1 %1724  ;;  %v1720_v10 = vpop.permute.xlu0 %1719 }
 0x246   :  { %v2254_v11 = vmul.f32 %v1725_v9, %v238_v7  ;;  %v2253_v12 = vmul.f32 %v1720_v10, %v237_v8  ;;  %v260_v9 = vld [vmem:[%s5508_s1 + $0x7c8] sm:$0xff]  ;;  %v259_v10 = vld [vmem:[%s5508_s1 + $0x7c0] sm:$0xff] }
 0x248   :  { %2543 = vst.msk [vmem:[%s5509_s2 + $0x718] sm:$0xff] %vm2315_vm0, %v2254_v11  ;;  %2542 = vst.msk [vmem:[%s5509_s2 + $0x710] sm:$0xff] %vm2315_vm0, %v2253_v12 }
 0x249   :  { %v1735_v15 = vpop.permute.xlu1 %1734  ;;  %v1730_v16 = vpop.permute.xlu0 %1729 }
 0x24a   :  { %v2256_v17 = vmul.f32 %v1735_v15, %v240_v13  ;;  %v2255_v18 = vmul.f32 %v1730_v16, %v239_v14  ;;  %v262_v15 = vld [vmem:[%s5508_s1 + $0x7d8] sm:$0xff]  ;;  %v261_v16 = vld [vmem:[%s5508_s1 + $0x7d0] sm:$0xff] }
 0x24c   :  { %2545 = vst.msk [vmem:[%s5509_s2 + $0x728] sm:$0xff] %vm2315_vm0, %v2256_v17  ;;  %2544 = vst.msk [vmem:[%s5509_s2 + $0x720] sm:$0xff] %vm2315_vm0, %v2255_v18 }
 0x24d   :  { %v1745_v21 = vpop.permute.xlu1 %1744  ;;  %v1740_v22 = vpop.permute.xlu0 %1739 }
 0x24e   :  { %v2258_v23 = vmul.f32 %v1745_v21, %v242_v19  ;;  %v2257_v24 = vmul.f32 %v1740_v22, %v241_v20  ;;  %v264_v21 = vld [vmem:[%s5508_s1 + $0x7e8] sm:$0xff]  ;;  %v263_v22 = vld [vmem:[%s5508_s1 + $0x7e0] sm:$0xff] }
 0x250   :  { %2547 = vst.msk [vmem:[%s5509_s2 + $0x738] sm:$0xff] %vm2315_vm0, %v2258_v23  ;;  %2546 = vst.msk [vmem:[%s5509_s2 + $0x730] sm:$0xff] %vm2315_vm0, %v2257_v24 }
 0x251   :  { %v1755_v27 = vpop.permute.xlu1 %1754  ;;  %v1750_v28 = vpop.permute.xlu0 %1749 }
 0x252   :  { %v2260_v29 = vmul.f32 %v1755_v27, %v244_v25  ;;  %v2259_v30 = vmul.f32 %v1750_v28, %v243_v26  ;;  %v266_v27 = vld [vmem:[%s5508_s1 + $0x7f8] sm:$0xff]  ;;  %v265_v28 = vld [vmem:[%s5508_s1 + $0x7f0] sm:$0xff] }
 0x254   :  { %2549 = vst.msk [vmem:[%s5509_s2 + $0x748] sm:$0xff] %vm2315_vm0, %v2260_v29  ;;  %2548 = vst.msk [vmem:[%s5509_s2 + $0x740] sm:$0xff] %vm2315_vm0, %v2259_v30 }
 0x255   :  { %v1765_v33 = vpop.permute.xlu1 %1764  ;;  %v1760_v34 = vpop.permute.xlu0 %1759 }
 0x256   :  { %v2262_v35 = vmul.f32 %v1765_v33, %v246_v31  ;;  %v2261_v36 = vmul.f32 %v1760_v34, %v245_v32  ;;  %v268_v33 = vld [vmem:[%s5508_s1 + $0x808] sm:$0xff]  ;;  %v267_v34 = vld [vmem:[%s5508_s1 + $0x800] sm:$0xff] }
 0x258   :  { %2551 = vst.msk [vmem:[%s5509_s2 + $0x758] sm:$0xff] %vm2315_vm0, %v2262_v35  ;;  %2550 = vst.msk [vmem:[%s5509_s2 + $0x750] sm:$0xff] %vm2315_vm0, %v2261_v36 }
 0x259   :  { %v1775_v39 = vpop.permute.xlu1 %1774  ;;  %v1770_v40 = vpop.permute.xlu0 %1769 }
 0x25a   :  { %v2264_v41 = vmul.f32 %v1775_v39, %v248_v37  ;;  %v2263_v42 = vmul.f32 %v1770_v40, %v247_v38  ;;  %v270_v39 = vld [vmem:[%s5508_s1 + $0x818] sm:$0xff]  ;;  %v269_v40 = vld [vmem:[%s5508_s1 + $0x810] sm:$0xff] }
 0x25c   :  { %2553 = vst.msk [vmem:[%s5509_s2 + $0x768] sm:$0xff] %vm2315_vm0, %v2264_v41  ;;  %2552 = vst.msk [vmem:[%s5509_s2 + $0x760] sm:$0xff] %vm2315_vm0, %v2263_v42 }
 0x25d   :  { %v1785_v45 = vpop.permute.xlu1 %1784  ;;  %v1780_v46 = vpop.permute.xlu0 %1779 }
 0x25e   :  { %v2266_v47 = vmul.f32 %v1785_v45, %v250_v43  ;;  %v2265_v48 = vmul.f32 %v1780_v46, %v249_v44  ;;  %v272_v45 = vld [vmem:[%s5508_s1 + $0x828] sm:$0xff]  ;;  %v271_v46 = vld [vmem:[%s5508_s1 + $0x820] sm:$0xff] }
 0x260   :  { %2555 = vst.msk [vmem:[%s5509_s2 + $0x778] sm:$0xff] %vm2315_vm0, %v2266_v47  ;;  %2554 = vst.msk [vmem:[%s5509_s2 + $0x770] sm:$0xff] %vm2315_vm0, %v2265_v48 }
 0x261   :  { %v1795_v51 = vpop.permute.xlu1 %1794  ;;  %v1790_v52 = vpop.permute.xlu0 %1789 }
 0x262   :  { %v2268_v53 = vmul.f32 %v1795_v51, %v252_v49  ;;  %v2267_v54 = vmul.f32 %v1790_v52, %v251_v50  ;;  %v274_v51 = vld [vmem:[%s5508_s1 + $0x838] sm:$0xff]  ;;  %v273_v52 = vld [vmem:[%s5508_s1 + $0x830] sm:$0xff] }
 0x264   :  { %2557 = vst.msk [vmem:[%s5509_s2 + $0x788] sm:$0xff] %vm2315_vm0, %v2268_v53  ;;  %2556 = vst.msk [vmem:[%s5509_s2 + $0x780] sm:$0xff] %vm2315_vm0, %v2267_v54 }
 0x265   :  { %v1805_v57 = vpop.permute.xlu1 %1804  ;;  %v1800_v58 = vpop.permute.xlu0 %1799 }
 0x266   :  { %v2270_v59 = vmul.f32 %v1805_v57, %v254_v55  ;;  %v2269_v60 = vmul.f32 %v1800_v58, %v253_v56  ;;  %v276_v57 = vld [vmem:[%s5508_s1 + $0x848] sm:$0xff]  ;;  %v275_v58 = vld [vmem:[%s5508_s1 + $0x840] sm:$0xff] }
 0x268   :  { %2559 = vst.msk [vmem:[%s5509_s2 + $0x798] sm:$0xff] %vm2315_vm0, %v2270_v59  ;;  %2558 = vst.msk [vmem:[%s5509_s2 + $0x790] sm:$0xff] %vm2315_vm0, %v2269_v60 }
 0x269   :  { %v1815_v63 = vpop.permute.xlu1 %1814  ;;  %v1810_v0 = vpop.permute.xlu0 %1809 }
 0x26a   :  { %v2272_v1 = vmul.f32 %v1815_v63, %v256_v61  ;;  %v2271_v2 = vmul.f32 %v1810_v0, %v255_v62  ;;  %v278_v63 = vld [vmem:[%s5508_s1 + $0x858] sm:$0xff]  ;;  %v277_v0 = vld [vmem:[%s5508_s1 + $0x850] sm:$0xff] }
 0x26c   :  { %2561 = vst.msk [vmem:[%s5509_s2 + $0x7a8] sm:$0xff] %vm2315_vm0, %v2272_v1  ;;  %2560 = vst.msk [vmem:[%s5509_s2 + $0x7a0] sm:$0xff] %vm2315_vm0, %v2271_v2 }
 0x26d   :  { %v1825_v5 = vpop.permute.xlu1 %1824  ;;  %v1820_v6 = vpop.permute.xlu0 %1819 }
 0x26e   :  { %v2274_v7 = vmul.f32 %v1825_v5, %v258_v3  ;;  %v2273_v8 = vmul.f32 %v1820_v6, %v257_v4  ;;  %v280_v5 = vld [vmem:[%s5508_s1 + $0x868] sm:$0xff]  ;;  %v279_v6 = vld [vmem:[%s5508_s1 + $0x860] sm:$0xff] }
 0x270   :  { %2563 = vst.msk [vmem:[%s5509_s2 + $0x7b8] sm:$0xff] %vm2315_vm0, %v2274_v7  ;;  %2562 = vst.msk [vmem:[%s5509_s2 + $0x7b0] sm:$0xff] %vm2315_vm0, %v2273_v8 }
 0x271   :  { %v1835_v11 = vpop.permute.xlu1 %1834  ;;  %v1830_v12 = vpop.permute.xlu0 %1829 }
 0x272   :  { %v2276_v13 = vmul.f32 %v1835_v11, %v260_v9  ;;  %v2275_v14 = vmul.f32 %v1830_v12, %v259_v10  ;;  %v282_v11 = vld [vmem:[%s5508_s1 + $0x878] sm:$0xff]  ;;  %v281_v12 = vld [vmem:[%s5508_s1 + $0x870] sm:$0xff] }
 0x274   :  { %2565 = vst.msk [vmem:[%s5509_s2 + $0x7c8] sm:$0xff] %vm2315_vm0, %v2276_v13  ;;  %2564 = vst.msk [vmem:[%s5509_s2 + $0x7c0] sm:$0xff] %vm2315_vm0, %v2275_v14 }
 0x275   :  { %v1845_v17 = vpop.permute.xlu1 %1844  ;;  %v1840_v18 = vpop.permute.xlu0 %1839 }
 0x276   :  { %v2278_v19 = vmul.f32 %v1845_v17, %v262_v15  ;;  %v2277_v20 = vmul.f32 %v1840_v18, %v261_v16  ;;  %v284_v17 = vld [vmem:[%s5508_s1 + $0x888] sm:$0xff]  ;;  %v283_v18 = vld [vmem:[%s5508_s1 + $0x880] sm:$0xff] }
 0x278   :  { %2567 = vst.msk [vmem:[%s5509_s2 + $0x7d8] sm:$0xff] %vm2315_vm0, %v2278_v19  ;;  %2566 = vst.msk [vmem:[%s5509_s2 + $0x7d0] sm:$0xff] %vm2315_vm0, %v2277_v20 }
 0x279   :  { %v1855_v23 = vpop.permute.xlu1 %1854  ;;  %v1850_v24 = vpop.permute.xlu0 %1849 }
 0x27a   :  { %v2280_v25 = vmul.f32 %v1855_v23, %v264_v21  ;;  %v2279_v26 = vmul.f32 %v1850_v24, %v263_v22  ;;  %v286_v23 = vld [vmem:[%s5508_s1 + $0x898] sm:$0xff]  ;;  %v285_v24 = vld [vmem:[%s5508_s1 + $0x890] sm:$0xff] }
 0x27c   :  { %2569 = vst.msk [vmem:[%s5509_s2 + $0x7e8] sm:$0xff] %vm2315_vm0, %v2280_v25  ;;  %2568 = vst.msk [vmem:[%s5509_s2 + $0x7e0] sm:$0xff] %vm2315_vm0, %v2279_v26 }
 0x27d   :  { %v1865_v29 = vpop.permute.xlu1 %1864  ;;  %v1860_v30 = vpop.permute.xlu0 %1859 }
 0x27e   :  { %v2282_v31 = vmul.f32 %v1865_v29, %v266_v27  ;;  %v2281_v32 = vmul.f32 %v1860_v30, %v265_v28  ;;  %v288_v29 = vld [vmem:[%s5508_s1 + $0x8a8] sm:$0xff]  ;;  %v287_v30 = vld [vmem:[%s5508_s1 + $0x8a0] sm:$0xff] }
 0x280   :  { %2571 = vst.msk [vmem:[%s5509_s2 + $0x7f8] sm:$0xff] %vm2315_vm0, %v2282_v31  ;;  %2570 = vst.msk [vmem:[%s5509_s2 + $0x7f0] sm:$0xff] %vm2315_vm0, %v2281_v32 }
 0x281   :  { %v1875_v35 = vpop.permute.xlu1 %1874  ;;  %v1870_v36 = vpop.permute.xlu0 %1869 }
 0x282   :  { %v2284_v37 = vmul.f32 %v1875_v35, %v268_v33  ;;  %v2283_v38 = vmul.f32 %v1870_v36, %v267_v34  ;;  %v290_v35 = vld [vmem:[%s5508_s1 + $0x8b8] sm:$0xff]  ;;  %v289_v36 = vld [vmem:[%s5508_s1 + $0x8b0] sm:$0xff] }
 0x284   :  { %2573 = vst.msk [vmem:[%s5509_s2 + $0x808] sm:$0xff] %vm2315_vm0, %v2284_v37  ;;  %2572 = vst.msk [vmem:[%s5509_s2 + $0x800] sm:$0xff] %vm2315_vm0, %v2283_v38 }
 0x285   :  { %v1885_v41 = vpop.permute.xlu1 %1884  ;;  %v1880_v42 = vpop.permute.xlu0 %1879 }
 0x286   :  { %v2286_v43 = vmul.f32 %v1885_v41, %v270_v39  ;;  %v2285_v44 = vmul.f32 %v1880_v42, %v269_v40  ;;  %v292_v41 = vld [vmem:[%s5508_s1 + $0x8c8] sm:$0xff]  ;;  %v291_v42 = vld [vmem:[%s5508_s1 + $0x8c0] sm:$0xff] }
 0x288   :  { %2575 = vst.msk [vmem:[%s5509_s2 + $0x818] sm:$0xff] %vm2315_vm0, %v2286_v43  ;;  %2574 = vst.msk [vmem:[%s5509_s2 + $0x810] sm:$0xff] %vm2315_vm0, %v2285_v44 }
 0x289   :  { %v1895_v47 = vpop.permute.xlu1 %1894  ;;  %v1890_v48 = vpop.permute.xlu0 %1889 }
 0x28a   :  { %v2288_v49 = vmul.f32 %v1895_v47, %v272_v45  ;;  %v2287_v50 = vmul.f32 %v1890_v48, %v271_v46  ;;  %v294_v47 = vld [vmem:[%s5508_s1 + $0x8d8] sm:$0xff]  ;;  %v293_v48 = vld [vmem:[%s5508_s1 + $0x8d0] sm:$0xff] }
 0x28c   :  { %2577 = vst.msk [vmem:[%s5509_s2 + $0x828] sm:$0xff] %vm2315_vm0, %v2288_v49  ;;  %2576 = vst.msk [vmem:[%s5509_s2 + $0x820] sm:$0xff] %vm2315_vm0, %v2287_v50 }
 0x28d   :  { %v1905_v53 = vpop.permute.xlu1 %1904  ;;  %v1900_v54 = vpop.permute.xlu0 %1899 }
 0x28e   :  { %v2290_v55 = vmul.f32 %v1905_v53, %v274_v51  ;;  %v2289_v56 = vmul.f32 %v1900_v54, %v273_v52  ;;  %v296_v53 = vld [vmem:[%s5508_s1 + $0x8e8] sm:$0xff]  ;;  %v295_v54 = vld [vmem:[%s5508_s1 + $0x8e0] sm:$0xff] }
 0x290   :  { %2579 = vst.msk [vmem:[%s5509_s2 + $0x838] sm:$0xff] %vm2315_vm0, %v2290_v55  ;;  %2578 = vst.msk [vmem:[%s5509_s2 + $0x830] sm:$0xff] %vm2315_vm0, %v2289_v56 }
 0x291   :  { %v1915_v59 = vpop.permute.xlu1 %1914  ;;  %v1910_v60 = vpop.permute.xlu0 %1909 }
 0x292   :  { %v2292_v61 = vmul.f32 %v1915_v59, %v276_v57  ;;  %v2291_v62 = vmul.f32 %v1910_v60, %v275_v58  ;;  %v298_v59 = vld [vmem:[%s5508_s1 + $0x8f8] sm:$0xff]  ;;  %v297_v60 = vld [vmem:[%s5508_s1 + $0x8f0] sm:$0xff] }
 0x294   :  { %2581 = vst.msk [vmem:[%s5509_s2 + $0x848] sm:$0xff] %vm2315_vm0, %v2292_v61  ;;  %2580 = vst.msk [vmem:[%s5509_s2 + $0x840] sm:$0xff] %vm2315_vm0, %v2291_v62 }
 0x295   :  { %v1925_v1 = vpop.permute.xlu1 %1924  ;;  %v1920_v2 = vpop.permute.xlu0 %1919 }
 0x296   :  { %v2294_v3 = vmul.f32 %v1925_v1, %v278_v63  ;;  %v2293_v4 = vmul.f32 %v1920_v2, %v277_v0 }
 0x298   :  { %2583 = vst.msk [vmem:[%s5509_s2 + $0x858] sm:$0xff] %vm2315_vm0, %v2294_v3  ;;  %2582 = vst.msk [vmem:[%s5509_s2 + $0x850] sm:$0xff] %vm2315_vm0, %v2293_v4 }
 0x299   :  { %v1935_v7 = vpop.permute.xlu1 %1934  ;;  %v1930_v8 = vpop.permute.xlu0 %1929 }
 0x29a   :  { %v2296_v9 = vmul.f32 %v1935_v7, %v280_v5  ;;  %v2295_v10 = vmul.f32 %v1930_v8, %v279_v6 }
 0x29c   :  { %2585 = vst.msk [vmem:[%s5509_s2 + $0x868] sm:$0xff] %vm2315_vm0, %v2296_v9  ;;  %2584 = vst.msk [vmem:[%s5509_s2 + $0x860] sm:$0xff] %vm2315_vm0, %v2295_v10 }
 0x29d   :  { %v1945_v13 = vpop.permute.xlu1 %1944  ;;  %v1940_v14 = vpop.permute.xlu0 %1939 }
 0x29e   :  { %v2298_v15 = vmul.f32 %v1945_v13, %v282_v11  ;;  %v2297_v16 = vmul.f32 %v1940_v14, %v281_v12 }
 0x2a0   :  { %2587 = vst.msk [vmem:[%s5509_s2 + $0x878] sm:$0xff] %vm2315_vm0, %v2298_v15  ;;  %2586 = vst.msk [vmem:[%s5509_s2 + $0x870] sm:$0xff] %vm2315_vm0, %v2297_v16 }
 0x2a1   :  { %v1955_v19 = vpop.permute.xlu1 %1954  ;;  %v1950_v20 = vpop.permute.xlu0 %1949 }
 0x2a2   :  { %v2300_v21 = vmul.f32 %v1955_v19, %v284_v17  ;;  %v2299_v22 = vmul.f32 %v1950_v20, %v283_v18 }
 0x2a4   :  { %2589 = vst.msk [vmem:[%s5509_s2 + $0x888] sm:$0xff] %vm2315_vm0, %v2300_v21  ;;  %2588 = vst.msk [vmem:[%s5509_s2 + $0x880] sm:$0xff] %vm2315_vm0, %v2299_v22 }
 0x2a5   :  { %v1965_v25 = vpop.permute.xlu1 %1964  ;;  %v1960_v26 = vpop.permute.xlu0 %1959 }
 0x2a6   :  { %v2302_v27 = vmul.f32 %v1965_v25, %v286_v23  ;;  %v2301_v28 = vmul.f32 %v1960_v26, %v285_v24 }
 0x2a8   :  { %2591 = vst.msk [vmem:[%s5509_s2 + $0x898] sm:$0xff] %vm2315_vm0, %v2302_v27  ;;  %2590 = vst.msk [vmem:[%s5509_s2 + $0x890] sm:$0xff] %vm2315_vm0, %v2301_v28 }
 0x2a9   :  { %v1975_v31 = vpop.permute.xlu1 %1974  ;;  %v1970_v32 = vpop.permute.xlu0 %1969 }
 0x2aa   :  { %v2304_v33 = vmul.f32 %v1975_v31, %v288_v29  ;;  %v2303_v34 = vmul.f32 %v1970_v32, %v287_v30 }
 0x2ac   :  { %2593 = vst.msk [vmem:[%s5509_s2 + $0x8a8] sm:$0xff] %vm2315_vm0, %v2304_v33  ;;  %2592 = vst.msk [vmem:[%s5509_s2 + $0x8a0] sm:$0xff] %vm2315_vm0, %v2303_v34 }
 0x2ad   :  { %v1985_v37 = vpop.permute.xlu1 %1984  ;;  %v1980_v38 = vpop.permute.xlu0 %1979 }
 0x2ae   :  { %v2306_v39 = vmul.f32 %v1985_v37, %v290_v35  ;;  %v2305_v40 = vmul.f32 %v1980_v38, %v289_v36 }
 0x2b0   :  { %2595 = vst.msk [vmem:[%s5509_s2 + $0x8b8] sm:$0xff] %vm2315_vm0, %v2306_v39  ;;  %2594 = vst.msk [vmem:[%s5509_s2 + $0x8b0] sm:$0xff] %vm2315_vm0, %v2305_v40 }
 0x2b1   :  { %v1995_v43 = vpop.permute.xlu1 %1994  ;;  %v1990_v44 = vpop.permute.xlu0 %1989 }
 0x2b2   :  { %v2308_v45 = vmul.f32 %v1995_v43, %v292_v41  ;;  %v2307_v46 = vmul.f32 %v1990_v44, %v291_v42 }
 0x2b4   :  { %2597 = vst.msk [vmem:[%s5509_s2 + $0x8c8] sm:$0xff] %vm2315_vm0, %v2308_v45  ;;  %2596 = vst.msk [vmem:[%s5509_s2 + $0x8c0] sm:$0xff] %vm2315_vm0, %v2307_v46 }
 0x2b5   :  { %v2005_v49 = vpop.permute.xlu1 %2004  ;;  %v2000_v50 = vpop.permute.xlu0 %1999 }
 0x2b6   :  { %v2310_v51 = vmul.f32 %v2005_v49, %v294_v47  ;;  %v2309_v52 = vmul.f32 %v2000_v50, %v293_v48 }
 0x2b8   :  { %2599 = vst.msk [vmem:[%s5509_s2 + $0x8d8] sm:$0xff] %vm2315_vm0, %v2310_v51  ;;  %2598 = vst.msk [vmem:[%s5509_s2 + $0x8d0] sm:$0xff] %vm2315_vm0, %v2309_v52 }
 0x2b9   :  { %v2015_v55 = vpop.permute.xlu1 %2014  ;;  %v2010_v56 = vpop.permute.xlu0 %2009 }
 0x2ba   :  { %v2312_v57 = vmul.f32 %v2015_v55, %v296_v53  ;;  %v2311_v58 = vmul.f32 %v2010_v56, %v295_v54 }
 0x2bc   :  { %2601 = vst.msk [vmem:[%s5509_s2 + $0x8e8] sm:$0xff] %vm2315_vm0, %v2312_v57  ;;  %2600 = vst.msk [vmem:[%s5509_s2 + $0x8e0] sm:$0xff] %vm2315_vm0, %v2311_v58 }
 0x2bd   :  { %v2025_v61 = vpop.permute.xlu1 %2024  ;;  %v2020_v62 = vpop.permute.xlu0 %2019 }
 0x2be   :  { %v2314_v63 = vmul.f32 %v2025_v61, %v298_v59  ;;  %v2313_v0 = vmul.f32 %v2020_v62, %v297_v60 }
 0x2c0   :  { %2603 = vst.msk [vmem:[%s5509_s2 + $0x8f8] sm:$0xff] %vm2315_vm0, %v2314_v63  ;;  %2602 = vst.msk [vmem:[%s5509_s2 + $0x8f0] sm:$0xff] %vm2315_vm0, %v2313_v0 }

</bundles_post_ra>
